<compile_context>
chip_gen: v7x
topology: tpu7x:2x2x1
jax: 0.10.0
libtpu: 0.0.40
codegen_flags: <defaults>
</compile_context>

<pallas_src>
import functools
import math

import jax
import jax.numpy as jnp
from jax.experimental import pallas as pl
from jax.experimental.pallas import tpu as pltpu

LN_EPS = 1e-12          # HF ViT default layer_norm_eps
_INV_SQRT2 = 0.7071067811865476


def _layernorm(x, gamma, beta):
    mu = jnp.mean(x, axis=-1, keepdims=True)
    var = jnp.mean((x - mu) ** 2, axis=-1, keepdims=True)
    return (x - mu) * jax.lax.rsqrt(var + LN_EPS) * gamma + beta


def _gelu_exact(x):
    # PyTorch / HF "gelu" (erf-based, exact)
    return 0.5 * x * (1.0 + jax.lax.erf(x * _INV_SQRT2))


# --------------------------------------------------------------------------- #
# Kernel: one full ViT layer for one batch element.
# --------------------------------------------------------------------------- #
def vit_layer_kernel(num_heads, emit_attn, *refs):
    (x_ref,
     ln1_g_ref, ln1_b_ref,
     wqkv_ref, bqkv_ref,
     wo_ref, bo_ref,
     ln2_g_ref, ln2_b_ref,
     w1_ref, b1_ref, w2_ref, b2_ref) = refs[:13]
    if emit_attn:
        out_ref, attn_ref = refs[13:]
    else:
        (out_ref,) = refs[13:]
        attn_ref = None

    cdt = wqkv_ref.dtype                         # matmul operand dtype (bf16)
    x = x_ref[0].astype(jnp.float32)             # (S, D) for this batch element
    S, D = x.shape
    H = num_heads
    dh = D // H

    # ---- layernorm_before + fused QKV projection (one lane-dense MXU matmul) ----
    h1 = _layernorm(x, ln1_g_ref[...], ln1_b_ref[...]).astype(cdt)
    qkv = jnp.dot(h1, wqkv_ref[...], preferred_element_type=jnp.float32) + bqkv_ref[...]
    qkv = qkv.astype(cdt)                        # (S, 3D); 1/sqrt(dh) folded into Wq/bq

    # Head-major views: one reshape+swapaxes relayout per tensor
    # (no per-head lane-slice stack, no VMEM scratch round trip).
    qh = qkv[:, 0 * D:1 * D].reshape(S, H, dh).swapaxes(0, 1)    # (H, S, dh)
    kh = qkv[:, 1 * D:2 * D].reshape(S, H, dh).swapaxes(0, 1)
    vh = qkv[:, 2 * D:3 * D].reshape(S, H, dh).swapaxes(0, 1)

    scores = jnp.einsum("hqd,hkd->hqk", qh, kh,
                        preferred_element_type=jnp.float32)      # (H, S, S)
    scores = scores - jnp.max(scores, axis=-1, keepdims=True)
    e = jnp.exp(scores)
    denom = jnp.sum(e, axis=-1, keepdims=True)
    if emit_attn:
        probs = e / denom                        # exact divide for the exported probs
        attn_ref[0] = probs.astype(attn_ref.dtype)
    else:
        probs = e * pl.reciprocal(denom, approx=True)   # EUP recip on the private path

    ctx = jnp.einsum("hqk,hkd->hqd", probs.astype(cdt), vh,
                     preferred_element_type=jnp.float32)         # (H, S, dh)
    ctx = ctx.astype(cdt).swapaxes(0, 1).reshape(S, D)           # (S, D), in registers

    attn_out = jnp.dot(ctx, wo_ref[...],
                       preferred_element_type=jnp.float32) + bo_ref[...]
    x = x + attn_out                                             # residual 1

    # ---- layernorm_after + MLP ----
    h2 = _layernorm(x, ln2_g_ref[...], ln2_b_ref[...]).astype(cdt)
    ff = jnp.dot(h2, w1_ref[...], preferred_element_type=jnp.float32) + b1_ref[...]
    ff = _gelu_exact(ff).astype(cdt)
    ff = jnp.dot(ff, w2_ref[...], preferred_element_type=jnp.float32) + b2_ref[...]
    out_ref[0] = (x + ff).astype(out_ref.dtype)                  # residual 2


# --------------------------------------------------------------------------- #
# Wrapper plumbing
# --------------------------------------------------------------------------- #
def _vmem_limit_bytes():
    """Explicit scoped-VMEM budget: ~75% of on-chip VMEM, capped at 96 MiB."""
    try:
        cap = int(pltpu.get_tpu_info().vmem_capacity_bytes)
    except Exception:
        cap = 64 << 20          # conservative (v7x per-core) if query unavailable
    return max(32 << 20, min(96 << 20, (cap * 3) // 4))


def _const_spec(shape, single_buffer):
    # Weights / biases / LN params: index_map is constant across the batch grid,
    # so a single VMEM buffer suffices (double-buffering buys nothing).
    index_map = lambda b: (0,) * len(shape)
    if single_buffer:
        return pl.BlockSpec(shape, index_map, pipeline_mode=pl.Buffered(1))
    return pl.BlockSpec(shape, index_map)


_BUFFERED1_OK = None


def _buffered1_supported():
    """One-time, tiny-shape probe for pl.Buffered(1) single-buffered input specs."""
    global _BUFFERED1_OK
    if _BUFFERED1_OK is None:
        try:
            def probe_kernel(a_ref, o_ref):
                o_ref[0] = a_ref[...] + 1.0
            out = pl.pallas_call(
                probe_kernel,
                grid=(2,),
                in_specs=[pl.BlockSpec((8, 128), lambda i: (0, 0),
                                       pipeline_mode=pl.Buffered(1))],
                out_specs=pl.BlockSpec((1, 8, 128), lambda i: (i, 0, 0)),
                out_shape=jax.ShapeDtypeStruct((2, 8, 128), jnp.float32),
            )(jnp.zeros((8, 128), jnp.float32))
            _BUFFERED1_OK = bool(jnp.all(jax.block_until_ready(out) == 1.0))
        except Exception:
            _BUFFERED1_OK = False
    return _BUFFERED1_OK


def _vit_layer_call(x, params, num_heads, emit_attn, single_buffer_weights, attn_dtype):
    B, S, D = x.shape
    Dff = params["w1"].shape[1]
    H = num_heads
    const = functools.partial(_const_spec, single_buffer=single_buffer_weights)

    in_specs = [
        pl.BlockSpec((1, S, D), lambda b: (b, 0, 0)),     # hidden_states
        const((1, D)), const((1, D)),                     # ln1 gamma / beta
        const((D, 3 * D)), const((1, 3 * D)),             # fused Wqkv, bqkv
        const((D, D)), const((1, D)),                     # Wo, bo
        const((1, D)), const((1, D)),                     # ln2 gamma / beta
        const((D, Dff)), const((1, Dff)),                 # W1, b1
        const((Dff, D)), const((1, D)),                   # W2, b2
    ]
    hidden_spec = pl.BlockSpec((1, S, D), lambda b: (b, 0, 0))
    hidden_shape = jax.ShapeDtypeStruct((B, S, D), x.dtype)
    if emit_attn:
        out_specs = [hidden_spec,
                     pl.BlockSpec((1, H, S, S), lambda b: (b, 0, 0, 0))]
        out_shape = [hidden_shape,
                     jax.ShapeDtypeStruct((B, H, S, S), attn_dtype)]
    else:
        out_specs = hidden_spec
        out_shape = hidden_shape

    # Advisory cost model (helps XLA schedule neighbours once the loop is jitted).
    wbytes = sum(int(v.size) * v.dtype.itemsize for v in params.values())
    flops = 2 * B * S * D * (3 * D + D + 2 * Dff) + 4 * B * H * S * S * (D // H)
    transc = B * H * S * S + B * S * Dff
    bytes_acc = wbytes + 2 * B * S * D * x.dtype.itemsize
    if emit_attn:
        bytes_acc += B * H * S * S * jnp.dtype(attn_dtype).itemsize

    grid_spec = pltpu.PrefetchScalarGridSpec(
        num_scalar_prefetch=0, grid=(B,),
        in_specs=in_specs, out_specs=out_specs)

    kernel = functools.partial(vit_layer_kernel, num_heads, emit_attn)
    fn = pl.pallas_call(
        kernel,
        grid_spec=grid_spec,
        out_shape=out_shape,
        input_output_aliases={0: 0},           # hidden in -> hidden out (same block map)
        cost_estimate=pl.CostEstimate(flops=int(flops),
                                      transcendentals=int(transc),
                                      bytes_accessed=int(bytes_acc)),
        compiler_params=pltpu.CompilerParams(
            dimension_semantics=("parallel",),
            vmem_limit_bytes=_vmem_limit_bytes()))
    result = fn(x,
                params["ln1_g"], params["ln1_b"],
                params["wqkv"], params["bqkv"],
                params["wo"], params["bo"],
                params["ln2_g"], params["ln2_b"],
                params["w1"], params["b1"], params["w2"], params["b2"])
    if emit_attn:
        return result[0], result[1]
    return result, None


@functools.partial(jax.jit, static_argnums=(0, 1, 2, 3, 4))
def _encoder_forward(num_heads, emit_flags, keep_flags, single_buffer_weights,
                     attn_dtype_name, hidden_states, params_tuple):
    """The whole layer loop under one jit: no per-layer host sync / eager dispatch."""
    attn_dtype = jnp.dtype(attn_dtype_name)
    all_attn, all_hidden = [], []
    for params, emit, keep in zip(params_tuple, emit_flags, keep_flags):
        hidden_states, probs = _vit_layer_call(
            hidden_states, params, num_heads, emit, single_buffer_weights, attn_dtype)
        all_attn.append(probs)                           # None when not emitted
        all_hidden.append(hidden_states if keep else None)
    return hidden_states, tuple(all_attn), tuple(all_hidden)


def _prepare_layer_params(p, num_heads, compute_dtype):
    """Repack per-layer params into the kernel layout.

    * Wq/Wk/Wv fused into one (D, 3D) matrix (compute_dtype, default bf16) with
      1/sqrt(dh) folded into the Q columns / bias (zero kernel cost).
    * Other matmul weights in compute_dtype; biases / LN params stay f32 (1, N).
    """
    wq = jnp.asarray(p["wq"], jnp.float32)
    wk = jnp.asarray(p["wk"], jnp.float32)
    wv = jnp.asarray(p["wv"], jnp.float32)
    bq = jnp.asarray(p["bq"], jnp.float32).reshape(1, -1)
    bk = jnp.asarray(p["bk"], jnp.float32).reshape(1, -1)
    bv = jnp.asarray(p["bv"], jnp.float32).reshape(1, -1)
    D = wq.shape[0]
    scale = 1.0 / math.sqrt(D // num_heads)
    return {
        "ln1_g": jnp.asarray(p["ln1_g"], jnp.float32).reshape(1, -1),
        "ln1_b": jnp.asarray(p["ln1_b"], jnp.float32).reshape(1, -1),
        "wqkv": jnp.concatenate([wq * scale, wk, wv], axis=1).astype(compute_dtype),
        "bqkv": jnp.concatenate([bq * scale, bk, bv], axis=1),
        "wo": jnp.asarray(p["wo"], compute_dtype),
        "bo": jnp.asarray(p["bo"], jnp.float32).reshape(1, -1),
        "ln2_g": jnp.asarray(p["ln2_g"], jnp.float32).reshape(1, -1),
        "ln2_b": jnp.asarray(p["ln2_b"], jnp.float32).reshape(1, -1),
        "w1": jnp.asarray(p["w1"], compute_dtype),
        "b1": jnp.asarray(p["b1"], jnp.float32).reshape(1, -1),
        "w2": jnp.asarray(p["w2"], compute_dtype),
        "b2": jnp.asarray(p["b2"], jnp.float32).reshape(1, -1),
    }


class MultiViTEncoderPallas:
    """Pallas-backed equivalent of MultiViTEncoder.forward."""

    def __init__(self, layer_params, num_heads, output_first_hidden_state,
                 hidden_state_selector=None, attention_selector=None,
                 compute_dtype=jnp.bfloat16, attn_probs_dtype=jnp.bfloat16):
        self.num_heads = num_heads
        self.output_first_hidden_state = output_first_hidden_state
        self.hidden_state_selector = hidden_state_selector or (lambda i: False)
        self.attention_selector = attention_selector or (lambda i: False)
        self.attn_dtype_name = jnp.dtype(attn_probs_dtype).name
        # One-time probe (no per-call try/except on the hot path).
        self.single_buffer_weights = _buffered1_supported()
        self.params_tuple = tuple(
            _prepare_layer_params(p, num_heads, compute_dtype) for p in layer_params)

    def __call__(self, hidden_states, head_mask=None, output_attentions=False,
                 output_hidden_states=False, return_dict=True):
        # TODO(synk): head_mask / layer_head_mask is not supported (forward default is None).
        L = len(self.params_tuple)
        sel_attn = tuple(bool(self.attention_selector(i)) for i in range(L))
        emit_flags = tuple(bool(output_attentions) and s for s in sel_attn)
        keep_flags = tuple(bool(output_hidden_states)
                           and bool(self.hidden_state_selector(i)) for i in range(L))

        hidden_states = jnp.asarray(hidden_states)
        last, attns, hiddens = _encoder_forward(
            self.num_heads, emit_flags, keep_flags, self.single_buffer_weights,
            self.attn_dtype_name, hidden_states, self.params_tuple)

        all_hidden_states = None
        if output_hidden_states:
            first = hidden_states if self.output_first_hidden_state else None
            all_hidden_states = (first,) + hiddens
        all_self_attentions = attns if output_attentions else None

        if not return_dict:
            return tuple(v for v in [last, all_hidden_states, all_self_attentions]
                         if v is not None)
        return {"last_hidden_state": last,
                "hidden_states": all_hidden_states,
                "attentions": all_self_attentions}


# --------------------------------------------------------------------------- #
# Test / reference
# --------------------------------------------------------------------------- #
def init_layer_params(key, D, Dff):
    ks = jax.random.split(key, 6)
    s = 0.02
    f32 = jnp.float32
    return {
        "ln1_g": jnp.ones((1, D), f32), "ln1_b": jnp.zeros((1, D), f32),
        "wq": s * jax.random.normal(ks[0], (D, D), f32), "bq": jnp.zeros((1, D), f32),
        "wk": s * jax.random.normal(ks[1], (D, D), f32), "bk": jnp.zeros((1, D), f32),
        "wv": s * jax.random.normal(ks[2], (D, D), f32), "bv": jnp.zeros((1, D), f32),
        "wo": s * jax.random.normal(ks[3], (D, D), f32), "bo": jnp.zeros((1, D), f32),
        "ln2_g": jnp.ones((1, D), f32), "ln2_b": jnp.zeros((1, D), f32),
        "w1": s * jax.random.normal(ks[4], (D, Dff), f32), "b1": jnp.zeros((1, Dff), f32),
        "w2": s * jax.random.normal(ks[5], (Dff, D), f32), "b2": jnp.zeros((1, D), f32),
    }


def _ref_layer(x, p, num_heads):
    """Pure-JAX f32 reference of one ViT layer (loose sanity check)."""
    def ln(t, g, b):
        mu = jnp.mean(t, axis=-1, keepdims=True)
        var = jnp.mean((t - mu) ** 2, axis=-1, keepdims=True)
        return (t - mu) * jax.lax.rsqrt(var + LN_EPS) * g[0] + b[0]

    B, S, D = x.shape
    H = num_heads
    dh = D // H
    h1 = ln(x, p["ln1_g"], p["ln1_b"])
    q = h1 @ p["wq"] + p["bq"][0]
    k = h1 @ p["wk"] + p["bk"][0]
    v = h1 @ p["wv"] + p["bv"][0]
    qh = q.reshape(B, S, H, dh).transpose(0, 2, 1, 3)
    kh = k.reshape(B, S, H, dh).transpose(0, 2, 1, 3)
    vh = v.reshape(B, S, H, dh).transpose(0, 2, 1, 3)
    scores = jnp.einsum("bhqd,bhkd->bhqk", qh, kh) / math.sqrt(dh)
    probs = jax.nn.softmax(scores, axis=-1)
    ctx = jnp.einsum("bhqk,bhkd->bhqd", probs, vh)
    ctx = ctx.transpose(0, 2, 1, 3).reshape(B, S, D)
    x = x + ctx @ p["wo"] + p["bo"][0]
    h2 = ln(x, p["ln2_g"], p["ln2_b"])
    ff = h2 @ p["w1"] + p["b1"][0]
    ff = 0.5 * ff * (1.0 + jax.lax.erf(ff * _INV_SQRT2))
    return x + ff @ p["w2"] + p["b2"][0], probs


if __name__ == "__main__":
    B, S, D, H, Dff, L = 2, 8, 32, 2, 64, 2

    root = jax.random.PRNGKey(0)
    x_key, *layer_keys = jax.random.split(root, L + 1)
    hidden_states = jax.random.normal(x_key, (B, S, D), jnp.float32)
    layer_params = [init_layer_params(k, D, Dff) for k in layer_keys]

    encoder = MultiViTEncoderPallas(
        layer_params,
        num_heads=H,
        output_first_hidden_state=True,
        hidden_state_selector=lambda i: True,
        attention_selector=lambda i: True,
        compute_dtype=jnp.bfloat16)

    out = encoder(hidden_states,
                  output_attentions=True,
                  output_hidden_states=True,
                  return_dict=True)
    out = jax.block_until_ready(out)          # single sync at the very end

    last = out["last_hidden_state"]

    # pure-JAX f32 reference (kernel uses bf16 matmul operands -> loose tolerance)
    ref = hidden_states
    ref_attn0 = None
    for li, p in enumerate(layer_params):
        ref, probs = _ref_layer(ref, p, H)
        if li == 0:
            ref_attn0 = probs

    assert last.shape == (B, S, D)
    assert len(out["hidden_states"]) == L + 1
    assert out["attentions"][0].shape == (B, H, S, S)
    assert jnp.allclose(last, ref, atol=7e-2, rtol=7e-2), \
        float(jnp.max(jnp.abs(last - ref)))
    assert jnp.allclose(out["attentions"][0].astype(jnp.float32), ref_attn0,
                        atol=3e-2, rtol=3e-2)
    print("KERNEL_OK")
</pallas_src>

<mosaic_0001>
module attributes {stable_mosaic.version = 11 : i64} {
  func.func @probe_kernel(%arg0: i32, %arg1: memref<8x128xf32, #tpu.memory_space<vmem>>, %arg2: memref<1x8x128xf32, #tpu.memory_space<vmem>>) attributes {dimension_semantics = [#tpu.dimension_semantics<arbitrary>], iteration_bounds = array<i64: 2>, scalar_prefetch = 0 : i64, scratch_operands = 0 : i64, tpu.core_type = #tpu.core_type<tc>, window_params = [{pipeline_mode = #tpu.pipeline_mode<synchronous>, transform_indices = @transform_0, window_bounds = array<i64: 8, 128>}, {transform_indices = @transform_1, window_bounds = array<i64: 1, 8, 128>}]} {
    %c0 = arith.constant 0 : index
    %c0_0 = arith.constant 0 : index
    %0 = vector.load %arg1[%c0, %c0_0] : memref<8x128xf32, #tpu.memory_space<vmem>>, vector<8x128xf32>
    %cst = arith.constant 1.000000e+00 : f32
    %1 = vector.broadcast %cst : f32 to vector<8x128xf32>
    %2 = arith.addf %0, %1 : vector<8x128xf32>
    %c0_1 = arith.constant 0 : index
    %c0_2 = arith.constant 0 : index
    %c0_3 = arith.constant 0 : index
    %3 = vector.load %arg2[%c0_1, %c0_2, %c0_3] : memref<1x8x128xf32, #tpu.memory_space<vmem>>, vector<1x8x128xf32>
    %4 = vector.shape_cast %3 : vector<1x8x128xf32> to vector<8x128xf32>
    %5 = vector.shape_cast %2 : vector<8x128xf32> to vector<1x8x128xf32>
    tpu.vector_store %arg2[%c0_1, %c0_2, %c0_3], %5 {strides = array<i32>} : memref<1x8x128xf32, #tpu.memory_space<vmem>>, vector<1x8x128xf32>,
    return
  }
  func.func @transform_0(%arg0: i32) -> (i32, i32) {
    %c0_i32 = arith.constant 0 : i32
    %c0_i32_0 = arith.constant 0 : i32
    %c0_i32_1 = arith.constant 0 : i32
    return %c0_i32, %c0_i32_0 : i32, i32
  }
  func.func @transform_1(%arg0: i32) -> (i32, i32, i32) {
    %c0_i32 = arith.constant 0 : i32
    %c0_i32_0 = arith.constant 0 : i32
    %c0_i32_1 = arith.constant 0 : i32
    return %arg0, %c0_i32, %c0_i32_0 : i32, i32, i32
  }
}

module attributes {stable_mosaic.version = 11 : i64} {
  func.func @vit_layer_kernel(%arg0: i32, %arg1: memref<1x8x32xf32, #tpu.memory_space<vmem>>, %arg2: memref<1x32xf32, #tpu.memory_space<vmem>>, %arg3: memref<1x32xf32, #tpu.memory_space<vmem>>, %arg4: memref<32x96xbf16, #tpu.memory_space<vmem>>, %arg5: memref<1x96xf32, #tpu.memory_space<vmem>>, %arg6: memref<32x32xbf16, #tpu.memory_space<vmem>>, %arg7: memref<1x32xf32, #tpu.memory_space<vmem>>, %arg8: memref<1x32xf32, #tpu.memory_space<vmem>>, %arg9: memref<1x32xf32, #tpu.memory_space<vmem>>, %arg10: memref<32x64xbf16, #tpu.memory_space<vmem>>, %arg11: memref<1x64xf32, #tpu.memory_space<vmem>>, %arg12: memref<64x32xbf16, #tpu.memory_space<vmem>>, %arg13: memref<1x32xf32, #tpu.memory_space<vmem>>, %arg14: memref<1x8x32xf32, #tpu.memory_space<vmem>>, %arg15: memref<1x2x8x8xbf16, #tpu.memory_space<vmem>>) attributes {dimension_semantics = [#tpu.dimension_semantics<parallel>], iteration_bounds = array<i64: 2>, scalar_prefetch = 0 : i64, scratch_operands = 0 : i64, tpu.core_type = #tpu.core_type<tc>, window_params = [{transform_indices = @transform_0, window_bounds = array<i64: 1, 8, 32>}, {pipeline_mode = #tpu.pipeline_mode<synchronous>, transform_indices = @transform_1, window_bounds = array<i64: 1, 32>}, {pipeline_mode = #tpu.pipeline_mode<synchronous>, transform_indices = @transform_2, window_bounds = array<i64: 1, 32>}, {pipeline_mode = #tpu.pipeline_mode<synchronous>, transform_indices = @transform_3, window_bounds = array<i64: 32, 96>}, {pipeline_mode = #tpu.pipeline_mode<synchronous>, transform_indices = @transform_4, window_bounds = array<i64: 1, 96>}, {pipeline_mode = #tpu.pipeline_mode<synchronous>, transform_indices = @transform_5, window_bounds = array<i64: 32, 32>}, {pipeline_mode = #tpu.pipeline_mode<synchronous>, transform_indices = @transform_6, window_bounds = array<i64: 1, 32>}, {pipeline_mode = #tpu.pipeline_mode<synchronous>, transform_indices = @transform_7, window_bounds = array<i64: 1, 32>}, {pipeline_mode = #tpu.pipeline_mode<synchronous>, transform_indices = @transform_8, window_bounds = array<i64: 1, 32>}, {pipeline_mode = #tpu.pipeline_mode<synchronous>, transform_indices = @transform_9, window_bounds = array<i64: 32, 64>}, {pipeline_mode = #tpu.pipeline_mode<synchronous>, transform_indices = @transform_10, window_bounds = array<i64: 1, 64>}, {pipeline_mode = #tpu.pipeline_mode<synchronous>, transform_indices = @transform_11, window_bounds = array<i64: 64, 32>}, {pipeline_mode = #tpu.pipeline_mode<synchronous>, transform_indices = @transform_12, window_bounds = array<i64: 1, 32>}, {transform_indices = @transform_13, window_bounds = array<i64: 1, 8, 32>}, {transform_indices = @transform_14, window_bounds = array<i64: 1, 2, 8, 8>}]} {
    %c0 = arith.constant 0 : index
    %c0_0 = arith.constant 0 : index
    %c0_1 = arith.constant 0 : index
    %0 = vector.load %arg1[%c0, %c0_0, %c0_1] : memref<1x8x32xf32, #tpu.memory_space<vmem>>, vector<1x8x32xf32>
    %1 = vector.shape_cast %0 : vector<1x8x32xf32> to vector<8x32xf32>
    %c0_2 = arith.constant 0 : index
    %c0_3 = arith.constant 0 : index
    %2 = vector.load %arg2[%c0_2, %c0_3] : memref<1x32xf32, #tpu.memory_space<vmem>>, vector<1x32xf32>
    %c0_4 = arith.constant 0 : index
    %c0_5 = arith.constant 0 : index
    %3 = vector.load %arg3[%c0_4, %c0_5] : memref<1x32xf32, #tpu.memory_space<vmem>>, vector<1x32xf32>
    %cst = arith.constant dense<0.000000e+00> : vector<8xf32>
    %4 = vector.multi_reduction <add>, %1, %cst [1] : vector<8x32xf32> to vector<8xf32>
    %5 = vector.shape_cast %4 : vector<8xf32> to vector<8x1xf32>
    %cst_6 = arith.constant 3.200000e+01 : f32
    %6 = vector.broadcast %cst_6 : f32 to vector<8x1xf32>
    %7 = arith.divf %5, %6 : vector<8x1xf32>
    %8 = vector.broadcast %7 : vector<8x1xf32> to vector<8x32xf32>
    %9 = arith.subf %1, %8 : vector<8x32xf32>
    %10 = arith.mulf %9, %9 : vector<8x32xf32>
    %cst_7 = arith.constant dense<0.000000e+00> : vector<8xf32>
    %11 = vector.multi_reduction <add>, %10, %cst_7 [1] : vector<8x32xf32> to vector<8xf32>
    %12 = vector.shape_cast %11 : vector<8xf32> to vector<8x1xf32>
    %cst_8 = arith.constant 3.200000e+01 : f32
    %13 = vector.broadcast %cst_8 : f32 to vector<8x1xf32>
    %14 = arith.divf %12, %13 : vector<8x1xf32>
    %15 = vector.broadcast %7 : vector<8x1xf32> to vector<8x32xf32>
    %16 = arith.subf %1, %15 : vector<8x32xf32>
    %cst_9 = arith.constant 9.99999996E-13 : f32
    %17 = vector.broadcast %cst_9 : f32 to vector<8x1xf32>
    %18 = arith.addf %14, %17 : vector<8x1xf32>
    %19 = math.rsqrt %18 : vector<8x1xf32>
    %20 = vector.broadcast %19 : vector<8x1xf32> to vector<8x32xf32>
    %21 = arith.mulf %16, %20 : vector<8x32xf32>
    %22 = vector.broadcast %2 : vector<1x32xf32> to vector<8x32xf32>
    %23 = arith.mulf %21, %22 : vector<8x32xf32>
    %24 = vector.broadcast %3 : vector<1x32xf32> to vector<8x32xf32>
    %25 = arith.addf %23, %24 : vector<8x32xf32>
    %26 = arith.truncf %25 : vector<8x32xf32> to vector<8x32xbf16>
    %c0_10 = arith.constant 0 : index
    %c0_11 = arith.constant 0 : index
    %27 = vector.load %arg4[%c0_10, %c0_11] : memref<32x96xbf16, #tpu.memory_space<vmem>>, vector<32x96xbf16>
    %cst_12 = arith.constant dense<0.000000e+00> : vector<8x96xf32>
    %28 = tpu.matmul %26, %27, %cst_12 {dimension_numbers = #tpu.dot_dimension_numbers<[1], [0], [0], [1], [0, 0, 1, 1], [], []>} : vector<8x32xbf16>, vector<32x96xbf16>, vector<8x96xf32> -> vector<8x96xf32>
    %c0_13 = arith.constant 0 : index
    %c0_14 = arith.constant 0 : index
    %29 = vector.load %arg5[%c0_13, %c0_14] : memref<1x96xf32, #tpu.memory_space<vmem>>, vector<1x96xf32>
    %30 = vector.broadcast %29 : vector<1x96xf32> to vector<8x96xf32>
    %31 = arith.addf %28, %30 : vector<8x96xf32>
    %32 = arith.truncf %31 : vector<8x96xf32> to vector<8x96xbf16>
    %33 = vector.extract_strided_slice %32 {offsets = [0, 0], sizes = [8, 32], strides = [1, 1]} : vector<8x96xbf16> to vector<8x32xbf16>
    %34 = vector.shape_cast %33 : vector<8x32xbf16> to vector<8x2x16xbf16>
    %35 = tpu.transpose %34, [1, 0, 2] : vector<8x2x16xbf16> -> vector<2x8x16xbf16>
    %36 = vector.extract_strided_slice %32 {offsets = [0, 32], sizes = [8, 32], strides = [1, 1]} : vector<8x96xbf16> to vector<8x32xbf16>
    %37 = vector.shape_cast %36 : vector<8x32xbf16> to vector<8x2x16xbf16>
    %38 = tpu.transpose %37, [1, 0, 2] : vector<8x2x16xbf16> -> vector<2x8x16xbf16>
    %39 = vector.extract_strided_slice %32 {offsets = [0, 64], sizes = [8, 32], strides = [1, 1]} : vector<8x96xbf16> to vector<8x32xbf16>
    %40 = vector.shape_cast %39 : vector<8x32xbf16> to vector<8x2x16xbf16>
    %41 = tpu.transpose %40, [1, 0, 2] : vector<8x2x16xbf16> -> vector<2x8x16xbf16>
    "tpu.trace_start"() <{level = 10 : i32, message = "hqd,hkd->hqk"}> : () -> ()
    %cst_15 = arith.constant dense<0.000000e+00> : vector<2x8x8xf32>
    %42 = tpu.matmul %35, %38, %cst_15 {dimension_numbers = #tpu.dot_dimension_numbers<[2], [2], [1], [1], [0, 0, 0, 1, 1, 1], [0], [0]>} : vector<2x8x16xbf16>, vector<2x8x16xbf16>, vector<2x8x8xf32> -> vector<2x8x8xf32>
    "tpu.trace_stop"() : () -> ()
    %cst_16 = arith.constant dense<0xFF800000> : vector<2x8xf32>
    %43 = vector.multi_reduction <maximumf>, %42, %cst_16 [2] : vector<2x8x8xf32> to vector<2x8xf32>
    %44 = vector.shape_cast %43 : vector<2x8xf32> to vector<2x8x1xf32>
    %45 = vector.broadcast %44 : vector<2x8x1xf32> to vector<2x8x8xf32>
    %46 = arith.subf %42, %45 : vector<2x8x8xf32>
    %47 = math.exp %46 : vector<2x8x8xf32>
    %cst_17 = arith.constant dense<0.000000e+00> : vector<2x8xf32>
    %48 = vector.multi_reduction <add>, %47, %cst_17 [2] : vector<2x8x8xf32> to vector<2x8xf32>
    %49 = vector.shape_cast %48 : vector<2x8xf32> to vector<2x8x1xf32>
    %50 = vector.broadcast %49 : vector<2x8x1xf32> to vector<2x8x8xf32>
    %51 = arith.divf %47, %50 : vector<2x8x8xf32>
    %52 = arith.truncf %51 : vector<2x8x8xf32> to vector<2x8x8xbf16>
    %c0_18 = arith.constant 0 : index
    %c0_19 = arith.constant 0 : index
    %c0_20 = arith.constant 0 : index
    %c0_21 = arith.constant 0 : index
    %53 = vector.load %arg15[%c0_18, %c0_19, %c0_20, %c0_21] : memref<1x2x8x8xbf16, #tpu.memory_space<vmem>>, vector<1x2x8x8xbf16>
    %54 = vector.shape_cast %53 : vector<1x2x8x8xbf16> to vector<2x8x8xbf16>
    %55 = vector.shape_cast %52 : vector<2x8x8xbf16> to vector<1x2x8x8xbf16>
    tpu.vector_store %arg15[%c0_18, %c0_19, %c0_20, %c0_21], %55 {strides = array<i32>} : memref<1x2x8x8xbf16, #tpu.memory_space<vmem>>, vector<1x2x8x8xbf16>,
    %56 = arith.truncf %51 : vector<2x8x8xf32> to vector<2x8x8xbf16>
    "tpu.trace_start"() <{level = 10 : i32, message = "hqk,hkd->hqd"}> : () -> ()
    %cst_22 = arith.constant dense<0.000000e+00> : vector<2x8x16xf32>
    %57 = tpu.matmul %56, %41, %cst_22 {dimension_numbers = #tpu.dot_dimension_numbers<[2], [1], [1], [2], [0, 0, 0, 1, 1, 2], [0], [0]>} : vector<2x8x8xbf16>, vector<2x8x16xbf16>, vector<2x8x16xf32> -> vector<2x8x16xf32>
    "tpu.trace_stop"() : () -> ()
    %58 = arith.truncf %57 : vector<2x8x16xf32> to vector<2x8x16xbf16>
    %59 = tpu.transpose %58, [1, 0, 2] : vector<2x8x16xbf16> -> vector<8x2x16xbf16>
    %60 = vector.shape_cast %59 : vector<8x2x16xbf16> to vector<8x32xbf16>
    %c0_23 = arith.constant 0 : index
    %c0_24 = arith.constant 0 : index
    %61 = vector.load %arg6[%c0_23, %c0_24] : memref<32x32xbf16, #tpu.memory_space<vmem>>, vector<32x32xbf16>
    %cst_25 = arith.constant dense<0.000000e+00> : vector<8x32xf32>
    %62 = tpu.matmul %60, %61, %cst_25 {dimension_numbers = #tpu.dot_dimension_numbers<[1], [0], [0], [1], [0, 0, 1, 1], [], []>} : vector<8x32xbf16>, vector<32x32xbf16>, vector<8x32xf32> -> vector<8x32xf32>
    %c0_26 = arith.constant 0 : index
    %c0_27 = arith.constant 0 : index
    %63 = vector.load %arg7[%c0_26, %c0_27] : memref<1x32xf32, #tpu.memory_space<vmem>>, vector<1x32xf32>
    %64 = vector.broadcast %63 : vector<1x32xf32> to vector<8x32xf32>
    %65 = arith.addf %62, %64 : vector<8x32xf32>
    %66 = arith.addf %1, %65 : vector<8x32xf32>
    %c0_28 = arith.constant 0 : index
    %c0_29 = arith.constant 0 : index
    %67 = vector.load %arg8[%c0_28, %c0_29] : memref<1x32xf32, #tpu.memory_space<vmem>>, vector<1x32xf32>
    %c0_30 = arith.constant 0 : index
    %c0_31 = arith.constant 0 : index
    %68 = vector.load %arg9[%c0_30, %c0_31] : memref<1x32xf32, #tpu.memory_space<vmem>>, vector<1x32xf32>
    %cst_32 = arith.constant dense<0.000000e+00> : vector<8xf32>
    %69 = vector.multi_reduction <add>, %66, %cst_32 [1] : vector<8x32xf32> to vector<8xf32>
    %70 = vector.shape_cast %69 : vector<8xf32> to vector<8x1xf32>
    %cst_33 = arith.constant 3.200000e+01 : f32
    %71 = vector.broadcast %cst_33 : f32 to vector<8x1xf32>
    %72 = arith.divf %70, %71 : vector<8x1xf32>
    %73 = vector.broadcast %72 : vector<8x1xf32> to vector<8x32xf32>
    %74 = arith.subf %66, %73 : vector<8x32xf32>
    %75 = arith.mulf %74, %74 : vector<8x32xf32>
    %cst_34 = arith.constant dense<0.000000e+00> : vector<8xf32>
    %76 = vector.multi_reduction <add>, %75, %cst_34 [1] : vector<8x32xf32> to vector<8xf32>
    %77 = vector.shape_cast %76 : vector<8xf32> to vector<8x1xf32>
    %cst_35 = arith.constant 3.200000e+01 : f32
    %78 = vector.broadcast %cst_35 : f32 to vector<8x1xf32>
    %79 = arith.divf %77, %78 : vector<8x1xf32>
    %80 = vector.broadcast %72 : vector<8x1xf32> to vector<8x32xf32>
    %81 = arith.subf %66, %80 : vector<8x32xf32>
    %cst_36 = arith.constant 9.99999996E-13 : f32
    %82 = vector.broadcast %cst_36 : f32 to vector<8x1xf32>
    %83 = arith.addf %79, %82 : vector<8x1xf32>
    %84 = math.rsqrt %83 : vector<8x1xf32>
    %85 = vector.broadcast %84 : vector<8x1xf32> to vector<8x32xf32>
    %86 = arith.mulf %81, %85 : vector<8x32xf32>
    %87 = vector.broadcast %67 : vector<1x32xf32> to vector<8x32xf32>
    %88 = arith.mulf %86, %87 : vector<8x32xf32>
    %89 = vector.broadcast %68 : vector<1x32xf32> to vector<8x32xf32>
    %90 = arith.addf %88, %89 : vector<8x32xf32>
    %91 = arith.truncf %90 : vector<8x32xf32> to vector<8x32xbf16>
    %c0_37 = arith.constant 0 : index
    %c0_38 = arith.constant 0 : index
    %92 = vector.load %arg10[%c0_37, %c0_38] : memref<32x64xbf16, #tpu.memory_space<vmem>>, vector<32x64xbf16>
    %cst_39 = arith.constant dense<0.000000e+00> : vector<8x64xf32>
    %93 = tpu.matmul %91, %92, %cst_39 {dimension_numbers = #tpu.dot_dimension_numbers<[1], [0], [0], [1], [0, 0, 1, 1], [], []>} : vector<8x32xbf16>, vector<32x64xbf16>, vector<8x64xf32> -> vector<8x64xf32>
    %c0_40 = arith.constant 0 : index
    %c0_41 = arith.constant 0 : index
    %94 = vector.load %arg11[%c0_40, %c0_41] : memref<1x64xf32, #tpu.memory_space<vmem>>, vector<1x64xf32>
    %95 = vector.broadcast %94 : vector<1x64xf32> to vector<8x64xf32>
    %96 = arith.addf %93, %95 : vector<8x64xf32>
    %cst_42 = arith.constant 5.000000e-01 : f32
    %97 = vector.broadcast %cst_42 : f32 to vector<8x64xf32>
    %98 = arith.mulf %97, %96 : vector<8x64xf32>
    %cst_43 = arith.constant 0.707106769 : f32
    %99 = vector.broadcast %cst_43 : f32 to vector<8x64xf32>
    %100 = arith.mulf %96, %99 : vector<8x64xf32>
    %101 = math.erf %100 : vector<8x64xf32>
    %cst_44 = arith.constant 1.000000e+00 : f32
    %102 = vector.broadcast %cst_44 : f32 to vector<8x64xf32>
    %103 = arith.addf %102, %101 : vector<8x64xf32>
    %104 = arith.mulf %98, %103 : vector<8x64xf32>
    %105 = arith.truncf %104 : vector<8x64xf32> to vector<8x64xbf16>
    %c0_45 = arith.constant 0 : index
    %c0_46 = arith.constant 0 : index
    %106 = vector.load %arg12[%c0_45, %c0_46] : memref<64x32xbf16, #tpu.memory_space<vmem>>, vector<64x32xbf16>
    %cst_47 = arith.constant dense<0.000000e+00> : vector<8x32xf32>
    %107 = tpu.matmul %105, %106, %cst_47 {dimension_numbers = #tpu.dot_dimension_numbers<[1], [0], [0], [1], [0, 0, 1, 1], [], []>} : vector<8x64xbf16>, vector<64x32xbf16>, vector<8x32xf32> -> vector<8x32xf32>
    %c0_48 = arith.constant 0 : index
    %c0_49 = arith.constant 0 : index
    %108 = vector.load %arg13[%c0_48, %c0_49] : memref<1x32xf32, #tpu.memory_space<vmem>>, vector<1x32xf32>
    %109 = vector.broadcast %108 : vector<1x32xf32> to vector<8x32xf32>
    %110 = arith.addf %107, %109 : vector<8x32xf32>
    %111 = arith.addf %66, %110 : vector<8x32xf32>
    %c0_50 = arith.constant 0 : index
    %c0_51 = arith.constant 0 : index
    %c0_52 = arith.constant 0 : index
    %112 = vector.load %arg14[%c0_50, %c0_51, %c0_52] : memref<1x8x32xf32, #tpu.memory_space<vmem>>, vector<1x8x32xf32>
    %113 = vector.shape_cast %112 : vector<1x8x32xf32> to vector<8x32xf32>
    %114 = vector.shape_cast %111 : vector<8x32xf32> to vector<1x8x32xf32>
    tpu.vector_store %arg14[%c0_50, %c0_51, %c0_52], %114 {strides = array<i32>} : memref<1x8x32xf32, #tpu.memory_space<vmem>>, vector<1x8x32xf32>,
    return
  }
  func.func @transform_0(%arg0: i32) -> (i32, i32, i32) {
    %c0_i32 = arith.constant 0 : i32
    %c0_i32_0 = arith.constant 0 : i32
    %c0_i32_1 = arith.constant 0 : i32
    return %arg0, %c0_i32, %c0_i32_0 : i32, i32, i32
  }
  func.func @transform_1(%arg0: i32) -> (i32, i32) {
    %c0_i32 = arith.constant 0 : i32
    %c0_i32_0 = arith.constant 0 : i32
    %c0_i32_1 = arith.constant 0 : i32
    return %c0_i32, %c0_i32_0 : i32, i32
  }
  func.func @transform_2(%arg0: i32) -> (i32, i32) {
    %c0_i32 = arith.constant 0 : i32
    %c0_i32_0 = arith.constant 0 : i32
    %c0_i32_1 = arith.constant 0 : i32
    return %c0_i32, %c0_i32_0 : i32, i32
  }
  func.func @transform_3(%arg0: i32) -> (i32, i32) {
    %c0_i32 = arith.constant 0 : i32
    %c0_i32_0 = arith.constant 0 : i32
    %c0_i32_1 = arith.constant 0 : i32
    return %c0_i32, %c0_i32_0 : i32, i32
  }
  func.func @transform_4(%arg0: i32) -> (i32, i32) {
    %c0_i32 = arith.constant 0 : i32
    %c0_i32_0 = arith.constant 0 : i32
    %c0_i32_1 = arith.constant 0 : i32
    return %c0_i32, %c0_i32_0 : i32, i32
  }
  func.func @transform_5(%arg0: i32) -> (i32, i32) {
    %c0_i32 = arith.constant 0 : i32
    %c0_i32_0 = arith.constant 0 : i32
    %c0_i32_1 = arith.constant 0 : i32
    return %c0_i32, %c0_i32_0 : i32, i32
  }
  func.func @transform_6(%arg0: i32) -> (i32, i32) {
    %c0_i32 = arith.constant 0 : i32
    %c0_i32_0 = arith.constant 0 : i32
    %c0_i32_1 = arith.constant 0 : i32
    return %c0_i32, %c0_i32_0 : i32, i32
  }
  func.func @transform_7(%arg0: i32) -> (i32, i32) {
    %c0_i32 = arith.constant 0 : i32
    %c0_i32_0 = arith.constant 0 : i32
    %c0_i32_1 = arith.constant 0 : i32
    return %c0_i32, %c0_i32_0 : i32, i32
  }
  func.func @transform_8(%arg0: i32) -> (i32, i32) {
    %c0_i32 = arith.constant 0 : i32
    %c0_i32_0 = arith.constant 0 : i32
    %c0_i32_1 = arith.constant 0 : i32
    return %c0_i32, %c0_i32_0 : i32, i32
  }
  func.func @transform_9(%arg0: i32) -> (i32, i32) {
    %c0_i32 = arith.constant 0 : i32
    %c0_i32_0 = arith.constant 0 : i32
    %c0_i32_1 = arith.constant 0 : i32
    return %c0_i32, %c0_i32_0 : i32, i32
  }
  func.func @transform_10(%arg0: i32) -> (i32, i32) {
    %c0_i32 = arith.constant 0 : i32
    %c0_i32_0 = arith.constant 0 : i32
    %c0_i32_1 = arith.constant 0 : i32
    return %c0_i32, %c0_i32_0 : i32, i32
  }
  func.func @transform_11(%arg0: i32) -> (i32, i32) {
    %c0_i32 = arith.constant 0 : i32
    %c0_i32_0 = arith.constant 0 : i32
    %c0_i32_1 = arith.constant 0 : i32
    return %c0_i32, %c0_i32_0 : i32, i32
  }
  func.func @transform_12(%arg0: i32) -> (i32, i32) {
    %c0_i32 = arith.constant 0 : i32
    %c0_i32_0 = arith.constant 0 : i32
    %c0_i32_1 = arith.constant 0 : i32
    return %c0_i32, %c0_i32_0 : i32, i32
  }
  func.func @transform_13(%arg0: i32) -> (i32, i32, i32) {
    %c0_i32 = arith.constant 0 : i32
    %c0_i32_0 = arith.constant 0 : i32
    %c0_i32_1 = arith.constant 0 : i32
    return %arg0, %c0_i32, %c0_i32_0 : i32, i32, i32
  }
  func.func @transform_14(%arg0: i32) -> (i32, i32, i32, i32) {
    %c0_i32 = arith.constant 0 : i32
    %c0_i32_0 = arith.constant 0 : i32
    %c0_i32_1 = arith.constant 0 : i32
    %c0_i32_2 = arith.constant 0 : i32
    return %arg0, %c0_i32, %c0_i32_0, %c0_i32_1 : i32, i32, i32, i32
  }
}

module attributes {stable_mosaic.version = 11 : i64} {
  func.func @vit_layer_kernel(%arg0: i32, %arg1: memref<1x8x32xf32, #tpu.memory_space<vmem>>, %arg2: memref<1x32xf32, #tpu.memory_space<vmem>>, %arg3: memref<1x32xf32, #tpu.memory_space<vmem>>, %arg4: memref<32x96xbf16, #tpu.memory_space<vmem>>, %arg5: memref<1x96xf32, #tpu.memory_space<vmem>>, %arg6: memref<32x32xbf16, #tpu.memory_space<vmem>>, %arg7: memref<1x32xf32, #tpu.memory_space<vmem>>, %arg8: memref<1x32xf32, #tpu.memory_space<vmem>>, %arg9: memref<1x32xf32, #tpu.memory_space<vmem>>, %arg10: memref<32x64xbf16, #tpu.memory_space<vmem>>, %arg11: memref<1x64xf32, #tpu.memory_space<vmem>>, %arg12: memref<64x32xbf16, #tpu.memory_space<vmem>>, %arg13: memref<1x32xf32, #tpu.memory_space<vmem>>, %arg14: memref<1x8x32xf32, #tpu.memory_space<vmem>>, %arg15: memref<1x2x8x8xbf16, #tpu.memory_space<vmem>>) attributes {dimension_semantics = [#tpu.dimension_semantics<parallel>], iteration_bounds = array<i64: 2>, scalar_prefetch = 0 : i64, scratch_operands = 0 : i64, tpu.core_type = #tpu.core_type<tc>, window_params = [{transform_indices = @transform_0, window_bounds = array<i64: 1, 8, 32>}, {pipeline_mode = #tpu.pipeline_mode<synchronous>, transform_indices = @transform_1, window_bounds = array<i64: 1, 32>}, {pipeline_mode = #tpu.pipeline_mode<synchronous>, transform_indices = @transform_2, window_bounds = array<i64: 1, 32>}, {pipeline_mode = #tpu.pipeline_mode<synchronous>, transform_indices = @transform_3, window_bounds = array<i64: 32, 96>}, {pipeline_mode = #tpu.pipeline_mode<synchronous>, transform_indices = @transform_4, window_bounds = array<i64: 1, 96>}, {pipeline_mode = #tpu.pipeline_mode<synchronous>, transform_indices = @transform_5, window_bounds = array<i64: 32, 32>}, {pipeline_mode = #tpu.pipeline_mode<synchronous>, transform_indices = @transform_6, window_bounds = array<i64: 1, 32>}, {pipeline_mode = #tpu.pipeline_mode<synchronous>, transform_indices = @transform_7, window_bounds = array<i64: 1, 32>}, {pipeline_mode = #tpu.pipeline_mode<synchronous>, transform_indices = @transform_8, window_bounds = array<i64: 1, 32>}, {pipeline_mode = #tpu.pipeline_mode<synchronous>, transform_indices = @transform_9, window_bounds = array<i64: 32, 64>}, {pipeline_mode = #tpu.pipeline_mode<synchronous>, transform_indices = @transform_10, window_bounds = array<i64: 1, 64>}, {pipeline_mode = #tpu.pipeline_mode<synchronous>, transform_indices = @transform_11, window_bounds = array<i64: 64, 32>}, {pipeline_mode = #tpu.pipeline_mode<synchronous>, transform_indices = @transform_12, window_bounds = array<i64: 1, 32>}, {transform_indices = @transform_13, window_bounds = array<i64: 1, 8, 32>}, {transform_indices = @transform_14, window_bounds = array<i64: 1, 2, 8, 8>}]} {
    %c0 = arith.constant 0 : index
    %c0_0 = arith.constant 0 : index
    %c0_1 = arith.constant 0 : index
    %0 = vector.load %arg1[%c0, %c0_0, %c0_1] : memref<1x8x32xf32, #tpu.memory_space<vmem>>, vector<1x8x32xf32>
    %1 = vector.shape_cast %0 : vector<1x8x32xf32> to vector<8x32xf32>
    %c0_2 = arith.constant 0 : index
    %c0_3 = arith.constant 0 : index
    %2 = vector.load %arg2[%c0_2, %c0_3] : memref<1x32xf32, #tpu.memory_space<vmem>>, vector<1x32xf32>
    %c0_4 = arith.constant 0 : index
    %c0_5 = arith.constant 0 : index
    %3 = vector.load %arg3[%c0_4, %c0_5] : memref<1x32xf32, #tpu.memory_space<vmem>>, vector<1x32xf32>
    %cst = arith.constant dense<0.000000e+00> : vector<8xf32>
    %4 = vector.multi_reduction <add>, %1, %cst [1] : vector<8x32xf32> to vector<8xf32>
    %5 = vector.shape_cast %4 : vector<8xf32> to vector<8x1xf32>
    %cst_6 = arith.constant 3.200000e+01 : f32
    %6 = vector.broadcast %cst_6 : f32 to vector<8x1xf32>
    %7 = arith.divf %5, %6 : vector<8x1xf32>
    %8 = vector.broadcast %7 : vector<8x1xf32> to vector<8x32xf32>
    %9 = arith.subf %1, %8 : vector<8x32xf32>
    %10 = arith.mulf %9, %9 : vector<8x32xf32>
    %cst_7 = arith.constant dense<0.000000e+00> : vector<8xf32>
    %11 = vector.multi_reduction <add>, %10, %cst_7 [1] : vector<8x32xf32> to vector<8xf32>
    %12 = vector.shape_cast %11 : vector<8xf32> to vector<8x1xf32>
    %cst_8 = arith.constant 3.200000e+01 : f32
    %13 = vector.broadcast %cst_8 : f32 to vector<8x1xf32>
    %14 = arith.divf %12, %13 : vector<8x1xf32>
    %15 = vector.broadcast %7 : vector<8x1xf32> to vector<8x32xf32>
    %16 = arith.subf %1, %15 : vector<8x32xf32>
    %cst_9 = arith.constant 9.99999996E-13 : f32
    %17 = vector.broadcast %cst_9 : f32 to vector<8x1xf32>
    %18 = arith.addf %14, %17 : vector<8x1xf32>
    %19 = math.rsqrt %18 : vector<8x1xf32>
    %20 = vector.broadcast %19 : vector<8x1xf32> to vector<8x32xf32>
    %21 = arith.mulf %16, %20 : vector<8x32xf32>
    %22 = vector.broadcast %2 : vector<1x32xf32> to vector<8x32xf32>
    %23 = arith.mulf %21, %22 : vector<8x32xf32>
    %24 = vector.broadcast %3 : vector<1x32xf32> to vector<8x32xf32>
    %25 = arith.addf %23, %24 : vector<8x32xf32>
    %26 = arith.truncf %25 : vector<8x32xf32> to vector<8x32xbf16>
    %c0_10 = arith.constant 0 : index
    %c0_11 = arith.constant 0 : index
    %27 = vector.load %arg4[%c0_10, %c0_11] : memref<32x96xbf16, #tpu.memory_space<vmem>>, vector<32x96xbf16>
    %cst_12 = arith.constant dense<0.000000e+00> : vector<8x96xf32>
    %28 = tpu.matmul %26, %27, %cst_12 {dimension_numbers = #tpu.dot_dimension_numbers<[1], [0], [0], [1], [0, 0, 1, 1], [], []>} : vector<8x32xbf16>, vector<32x96xbf16>, vector<8x96xf32> -> vector<8x96xf32>
    %c0_13 = arith.constant 0 : index
    %c0_14 = arith.constant 0 : index
    %29 = vector.load %arg5[%c0_13, %c0_14] : memref<1x96xf32, #tpu.memory_space<vmem>>, vector<1x96xf32>
    %30 = vector.broadcast %29 : vector<1x96xf32> to vector<8x96xf32>
    %31 = arith.addf %28, %30 : vector<8x96xf32>
    %32 = arith.truncf %31 : vector<8x96xf32> to vector<8x96xbf16>
    %33 = vector.extract_strided_slice %32 {offsets = [0, 0], sizes = [8, 32], strides = [1, 1]} : vector<8x96xbf16> to vector<8x32xbf16>
    %34 = vector.shape_cast %33 : vector<8x32xbf16> to vector<8x2x16xbf16>
    %35 = tpu.transpose %34, [1, 0, 2] : vector<8x2x16xbf16> -> vector<2x8x16xbf16>
    %36 = vector.extract_strided_slice %32 {offsets = [0, 32], sizes = [8, 32], strides = [1, 1]} : vector<8x96xbf16> to vector<8x32xbf16>
    %37 = vector.shape_cast %36 : vector<8x32xbf16> to vector<8x2x16xbf16>
    %38 = tpu.transpose %37, [1, 0, 2] : vector<8x2x16xbf16> -> vector<2x8x16xbf16>
    %39 = vector.extract_strided_slice %32 {offsets = [0, 64], sizes = [8, 32], strides = [1, 1]} : vector<8x96xbf16> to vector<8x32xbf16>
    %40 = vector.shape_cast %39 : vector<8x32xbf16> to vector<8x2x16xbf16>
    %41 = tpu.transpose %40, [1, 0, 2] : vector<8x2x16xbf16> -> vector<2x8x16xbf16>
    "tpu.trace_start"() <{level = 10 : i32, message = "hqd,hkd->hqk"}> : () -> ()
    %cst_15 = arith.constant dense<0.000000e+00> : vector<2x8x8xf32>
    %42 = tpu.matmul %35, %38, %cst_15 {dimension_numbers = #tpu.dot_dimension_numbers<[2], [2], [1], [1], [0, 0, 0, 1, 1, 1], [0], [0]>} : vector<2x8x16xbf16>, vector<2x8x16xbf16>, vector<2x8x8xf32> -> vector<2x8x8xf32>
    "tpu.trace_stop"() : () -> ()
    %cst_16 = arith.constant dense<0xFF800000> : vector<2x8xf32>
    %43 = vector.multi_reduction <maximumf>, %42, %cst_16 [2] : vector<2x8x8xf32> to vector<2x8xf32>
    %44 = vector.shape_cast %43 : vector<2x8xf32> to vector<2x8x1xf32>
    %45 = vector.broadcast %44 : vector<2x8x1xf32> to vector<2x8x8xf32>
    %46 = arith.subf %42, %45 : vector<2x8x8xf32>
    %47 = math.exp %46 : vector<2x8x8xf32>
    %cst_17 = arith.constant dense<0.000000e+00> : vector<2x8xf32>
    %48 = vector.multi_reduction <add>, %47, %cst_17 [2] : vector<2x8x8xf32> to vector<2x8xf32>
    %49 = vector.shape_cast %48 : vector<2x8xf32> to vector<2x8x1xf32>
    %50 = vector.broadcast %49 : vector<2x8x1xf32> to vector<2x8x8xf32>
    %51 = arith.divf %47, %50 : vector<2x8x8xf32>
    %52 = arith.truncf %51 : vector<2x8x8xf32> to vector<2x8x8xbf16>
    %c0_18 = arith.constant 0 : index
    %c0_19 = arith.constant 0 : index
    %c0_20 = arith.constant 0 : index
    %c0_21 = arith.constant 0 : index
    %53 = vector.load %arg15[%c0_18, %c0_19, %c0_20, %c0_21] : memref<1x2x8x8xbf16, #tpu.memory_space<vmem>>, vector<1x2x8x8xbf16>
    %54 = vector.shape_cast %53 : vector<1x2x8x8xbf16> to vector<2x8x8xbf16>
    %55 = vector.shape_cast %52 : vector<2x8x8xbf16> to vector<1x2x8x8xbf16>
    tpu.vector_store %arg15[%c0_18, %c0_19, %c0_20, %c0_21], %55 {strides = array<i32>} : memref<1x2x8x8xbf16, #tpu.memory_space<vmem>>, vector<1x2x8x8xbf16>,
    %56 = arith.truncf %51 : vector<2x8x8xf32> to vector<2x8x8xbf16>
    "tpu.trace_start"() <{level = 10 : i32, message = "hqk,hkd->hqd"}> : () -> ()
    %cst_22 = arith.constant dense<0.000000e+00> : vector<2x8x16xf32>
    %57 = tpu.matmul %56, %41, %cst_22 {dimension_numbers = #tpu.dot_dimension_numbers<[2], [1], [1], [2], [0, 0, 0, 1, 1, 2], [0], [0]>} : vector<2x8x8xbf16>, vector<2x8x16xbf16>, vector<2x8x16xf32> -> vector<2x8x16xf32>
    "tpu.trace_stop"() : () -> ()
    %58 = arith.truncf %57 : vector<2x8x16xf32> to vector<2x8x16xbf16>
    %59 = tpu.transpose %58, [1, 0, 2] : vector<2x8x16xbf16> -> vector<8x2x16xbf16>
    %60 = vector.shape_cast %59 : vector<8x2x16xbf16> to vector<8x32xbf16>
    %c0_23 = arith.constant 0 : index
    %c0_24 = arith.constant 0 : index
    %61 = vector.load %arg6[%c0_23, %c0_24] : memref<32x32xbf16, #tpu.memory_space<vmem>>, vector<32x32xbf16>
    %cst_25 = arith.constant dense<0.000000e+00> : vector<8x32xf32>
    %62 = tpu.matmul %60, %61, %cst_25 {dimension_numbers = #tpu.dot_dimension_numbers<[1], [0], [0], [1], [0, 0, 1, 1], [], []>} : vector<8x32xbf16>, vector<32x32xbf16>, vector<8x32xf32> -> vector<8x32xf32>
    %c0_26 = arith.constant 0 : index
    %c0_27 = arith.constant 0 : index
    %63 = vector.load %arg7[%c0_26, %c0_27] : memref<1x32xf32, #tpu.memory_space<vmem>>, vector<1x32xf32>
    %64 = vector.broadcast %63 : vector<1x32xf32> to vector<8x32xf32>
    %65 = arith.addf %62, %64 : vector<8x32xf32>
    %66 = arith.addf %1, %65 : vector<8x32xf32>
    %c0_28 = arith.constant 0 : index
    %c0_29 = arith.constant 0 : index
    %67 = vector.load %arg8[%c0_28, %c0_29] : memref<1x32xf32, #tpu.memory_space<vmem>>, vector<1x32xf32>
    %c0_30 = arith.constant 0 : index
    %c0_31 = arith.constant 0 : index
    %68 = vector.load %arg9[%c0_30, %c0_31] : memref<1x32xf32, #tpu.memory_space<vmem>>, vector<1x32xf32>
    %cst_32 = arith.constant dense<0.000000e+00> : vector<8xf32>
    %69 = vector.multi_reduction <add>, %66, %cst_32 [1] : vector<8x32xf32> to vector<8xf32>
    %70 = vector.shape_cast %69 : vector<8xf32> to vector<8x1xf32>
    %cst_33 = arith.constant 3.200000e+01 : f32
    %71 = vector.broadcast %cst_33 : f32 to vector<8x1xf32>
    %72 = arith.divf %70, %71 : vector<8x1xf32>
    %73 = vector.broadcast %72 : vector<8x1xf32> to vector<8x32xf32>
    %74 = arith.subf %66, %73 : vector<8x32xf32>
    %75 = arith.mulf %74, %74 : vector<8x32xf32>
    %cst_34 = arith.constant dense<0.000000e+00> : vector<8xf32>
    %76 = vector.multi_reduction <add>, %75, %cst_34 [1] : vector<8x32xf32> to vector<8xf32>
    %77 = vector.shape_cast %76 : vector<8xf32> to vector<8x1xf32>
    %cst_35 = arith.constant 3.200000e+01 : f32
    %78 = vector.broadcast %cst_35 : f32 to vector<8x1xf32>
    %79 = arith.divf %77, %78 : vector<8x1xf32>
    %80 = vector.broadcast %72 : vector<8x1xf32> to vector<8x32xf32>
    %81 = arith.subf %66, %80 : vector<8x32xf32>
    %cst_36 = arith.constant 9.99999996E-13 : f32
    %82 = vector.broadcast %cst_36 : f32 to vector<8x1xf32>
    %83 = arith.addf %79, %82 : vector<8x1xf32>
    %84 = math.rsqrt %83 : vector<8x1xf32>
    %85 = vector.broadcast %84 : vector<8x1xf32> to vector<8x32xf32>
    %86 = arith.mulf %81, %85 : vector<8x32xf32>
    %87 = vector.broadcast %67 : vector<1x32xf32> to vector<8x32xf32>
    %88 = arith.mulf %86, %87 : vector<8x32xf32>
    %89 = vector.broadcast %68 : vector<1x32xf32> to vector<8x32xf32>
    %90 = arith.addf %88, %89 : vector<8x32xf32>
    %91 = arith.truncf %90 : vector<8x32xf32> to vector<8x32xbf16>
    %c0_37 = arith.constant 0 : index
    %c0_38 = arith.constant 0 : index
    %92 = vector.load %arg10[%c0_37, %c0_38] : memref<32x64xbf16, #tpu.memory_space<vmem>>, vector<32x64xbf16>
    %cst_39 = arith.constant dense<0.000000e+00> : vector<8x64xf32>
    %93 = tpu.matmul %91, %92, %cst_39 {dimension_numbers = #tpu.dot_dimension_numbers<[1], [0], [0], [1], [0, 0, 1, 1], [], []>} : vector<8x32xbf16>, vector<32x64xbf16>, vector<8x64xf32> -> vector<8x64xf32>
    %c0_40 = arith.constant 0 : index
    %c0_41 = arith.constant 0 : index
    %94 = vector.load %arg11[%c0_40, %c0_41] : memref<1x64xf32, #tpu.memory_space<vmem>>, vector<1x64xf32>
    %95 = vector.broadcast %94 : vector<1x64xf32> to vector<8x64xf32>
    %96 = arith.addf %93, %95 : vector<8x64xf32>
    %cst_42 = arith.constant 5.000000e-01 : f32
    %97 = vector.broadcast %cst_42 : f32 to vector<8x64xf32>
    %98 = arith.mulf %97, %96 : vector<8x64xf32>
    %cst_43 = arith.constant 0.707106769 : f32
    %99 = vector.broadcast %cst_43 : f32 to vector<8x64xf32>
    %100 = arith.mulf %96, %99 : vector<8x64xf32>
    %101 = math.erf %100 : vector<8x64xf32>
    %cst_44 = arith.constant 1.000000e+00 : f32
    %102 = vector.broadcast %cst_44 : f32 to vector<8x64xf32>
    %103 = arith.addf %102, %101 : vector<8x64xf32>
    %104 = arith.mulf %98, %103 : vector<8x64xf32>
    %105 = arith.truncf %104 : vector<8x64xf32> to vector<8x64xbf16>
    %c0_45 = arith.constant 0 : index
    %c0_46 = arith.constant 0 : index
    %106 = vector.load %arg12[%c0_45, %c0_46] : memref<64x32xbf16, #tpu.memory_space<vmem>>, vector<64x32xbf16>
    %cst_47 = arith.constant dense<0.000000e+00> : vector<8x32xf32>
    %107 = tpu.matmul %105, %106, %cst_47 {dimension_numbers = #tpu.dot_dimension_numbers<[1], [0], [0], [1], [0, 0, 1, 1], [], []>} : vector<8x64xbf16>, vector<64x32xbf16>, vector<8x32xf32> -> vector<8x32xf32>
    %c0_48 = arith.constant 0 : index
    %c0_49 = arith.constant 0 : index
    %108 = vector.load %arg13[%c0_48, %c0_49] : memref<1x32xf32, #tpu.memory_space<vmem>>, vector<1x32xf32>
    %109 = vector.broadcast %108 : vector<1x32xf32> to vector<8x32xf32>
    %110 = arith.addf %107, %109 : vector<8x32xf32>
    %111 = arith.addf %66, %110 : vector<8x32xf32>
    %c0_50 = arith.constant 0 : index
    %c0_51 = arith.constant 0 : index
    %c0_52 = arith.constant 0 : index
    %112 = vector.load %arg14[%c0_50, %c0_51, %c0_52] : memref<1x8x32xf32, #tpu.memory_space<vmem>>, vector<1x8x32xf32>
    %113 = vector.shape_cast %112 : vector<1x8x32xf32> to vector<8x32xf32>
    %114 = vector.shape_cast %111 : vector<8x32xf32> to vector<1x8x32xf32>
    tpu.vector_store %arg14[%c0_50, %c0_51, %c0_52], %114 {strides = array<i32>} : memref<1x8x32xf32, #tpu.memory_space<vmem>>, vector<1x8x32xf32>,
    return
  }
  func.func @transform_0(%arg0: i32) -> (i32, i32, i32) {
    %c0_i32 = arith.constant 0 : i32
    %c0_i32_0 = arith.constant 0 : i32
    %c0_i32_1 = arith.constant 0 : i32
    return %arg0, %c0_i32, %c0_i32_0 : i32, i32, i32
  }
  func.func @transform_1(%arg0: i32) -> (i32, i32) {
    %c0_i32 = arith.constant 0 : i32
    %c0_i32_0 = arith.constant 0 : i32
    %c0_i32_1 = arith.constant 0 : i32
    return %c0_i32, %c0_i32_0 : i32, i32
  }
  func.func @transform_2(%arg0: i32) -> (i32, i32) {
    %c0_i32 = arith.constant 0 : i32
    %c0_i32_0 = arith.constant 0 : i32
    %c0_i32_1 = arith.constant 0 : i32
    return %c0_i32, %c0_i32_0 : i32, i32
  }
  func.func @transform_3(%arg0: i32) -> (i32, i32) {
    %c0_i32 = arith.constant 0 : i32
    %c0_i32_0 = arith.constant 0 : i32
    %c0_i32_1 = arith.constant 0 : i32
    return %c0_i32, %c0_i32_0 : i32, i32
  }
  func.func @transform_4(%arg0: i32) -> (i32, i32) {
    %c0_i32 = arith.constant 0 : i32
    %c0_i32_0 = arith.constant 0 : i32
    %c0_i32_1 = arith.constant 0 : i32
    return %c0_i32, %c0_i32_0 : i32, i32
  }
  func.func @transform_5(%arg0: i32) -> (i32, i32) {
    %c0_i32 = arith.constant 0 : i32
    %c0_i32_0 = arith.constant 0 : i32
    %c0_i32_1 = arith.constant 0 : i32
    return %c0_i32, %c0_i32_0 : i32, i32
  }
  func.func @transform_6(%arg0: i32) -> (i32, i32) {
    %c0_i32 = arith.constant 0 : i32
    %c0_i32_0 = arith.constant 0 : i32
    %c0_i32_1 = arith.constant 0 : i32
    return %c0_i32, %c0_i32_0 : i32, i32
  }
  func.func @transform_7(%arg0: i32) -> (i32, i32) {
    %c0_i32 = arith.constant 0 : i32
    %c0_i32_0 = arith.constant 0 : i32
    %c0_i32_1 = arith.constant 0 : i32
    return %c0_i32, %c0_i32_0 : i32, i32
  }
  func.func @transform_8(%arg0: i32) -> (i32, i32) {
    %c0_i32 = arith.constant 0 : i32
    %c0_i32_0 = arith.constant 0 : i32
    %c0_i32_1 = arith.constant 0 : i32
    return %c0_i32, %c0_i32_0 : i32, i32
  }
  func.func @transform_9(%arg0: i32) -> (i32, i32) {
    %c0_i32 = arith.constant 0 : i32
    %c0_i32_0 = arith.constant 0 : i32
    %c0_i32_1 = arith.constant 0 : i32
    return %c0_i32, %c0_i32_0 : i32, i32
  }
  func.func @transform_10(%arg0: i32) -> (i32, i32) {
    %c0_i32 = arith.constant 0 : i32
    %c0_i32_0 = arith.constant 0 : i32
    %c0_i32_1 = arith.constant 0 : i32
    return %c0_i32, %c0_i32_0 : i32, i32
  }
  func.func @transform_11(%arg0: i32) -> (i32, i32) {
    %c0_i32 = arith.constant 0 : i32
    %c0_i32_0 = arith.constant 0 : i32
    %c0_i32_1 = arith.constant 0 : i32
    return %c0_i32, %c0_i32_0 : i32, i32
  }
  func.func @transform_12(%arg0: i32) -> (i32, i32) {
    %c0_i32 = arith.constant 0 : i32
    %c0_i32_0 = arith.constant 0 : i32
    %c0_i32_1 = arith.constant 0 : i32
    return %c0_i32, %c0_i32_0 : i32, i32
  }
  func.func @transform_13(%arg0: i32) -> (i32, i32, i32) {
    %c0_i32 = arith.constant 0 : i32
    %c0_i32_0 = arith.constant 0 : i32
    %c0_i32_1 = arith.constant 0 : i32
    return %arg0, %c0_i32, %c0_i32_0 : i32, i32, i32
  }
  func.func @transform_14(%arg0: i32) -> (i32, i32, i32, i32) {
    %c0_i32 = arith.constant 0 : i32
    %c0_i32_0 = arith.constant 0 : i32
    %c0_i32_1 = arith.constant 0 : i32
    %c0_i32_2 = arith.constant 0 : i32
    return %arg0, %c0_i32, %c0_i32_0, %c0_i32_1 : i32, i32, i32, i32
  }
}

</mosaic_0001>

<bundles_post_ra>
// kernel: tpu_custom_call.1
= control target key start
LH: loop header
LB: loop body
LE: loop exit
PB: predicated region body
PF: predicated region fallthrough
CT: control target
= control target key end

     0   :  { %6 = vsyncpa [#allocation3], 0  ;;  %s482_s0 = inlined_call_operand.hbm [shape: f32[8,128], index: 0, kind: input, shape index: {}]   ;;  %s483_s1 = inlined_call_operand.hbm [shape: f32[2,8,128], index: 1, kind: output, shape index: {}]  }
   0x1   :  { %7 = vsyncpa [#allocation4], 0 }
   0x2   :  { %9 = vsyncpa [#allocation4 + $0x1], 0  ;;  %s352_s6 = smov 0   ;;  %s354_s7 = smov 0  }
   0x3   :  { %s356_s8 = smov 0   ;;  %s358_s9 = smov 0  }
   0x4 LB: > { %s373_s10 = sadd.s32 4294967295, %s338_s9   ;;  %s184_s11 = sadd.s32 4294967294, %s338_s9   ;;  %s338_s9 = sphi %s358_s9, %s499_s9   ;;  %s334_s8 = sphi %s356_s8, %s498_s8   ;;  %s330_s7 = sphi %s354_s7, %s497_s7   ;;  %s326_s6 = sphi %s352_s6, %s496_s6  }
   0x5   : > { %s377_s12 = sadd.s32 1, %s338_s9   ;;  %s43_s13 = sadd.s32 1, %s334_s8 }
   0x6   : > { %s40_s14 = ssub.s32 %s338_s9, %s377_s12  ;;  %p53_p0 = scmp.ne.s32.totalorder %s334_s8, %s330_s7 }
   0x7   : > { %p41_p1 = scmp.eq.s32.totalorder %s40_s14, 0  ;;  %p54_p2 = scmp.eq.s32.totalorder %s373_s10, 1 }
   0x8   : > { %p59_p3 = scmp.ne.s32.totalorder %s330_s7, %s326_s6  ;;  %p60_p4 = scmp.eq.s32.totalorder %s184_s11, 1 }
   0x9   : > { %s388_s15 = scalar_select %p41_p1, %s334_s8, %s43_s13  }
   0xa   : > { %p390_p5 = por %p54_p2, %p53_p0  ;;  %p394_p6 = por %p60_p4, %p59_p3 }
   0xb   : > { %p185_p7 = scmp.ge.s32.totalorder %s338_s9, 1  ;;  %p67_p8 = scmp.lt.s32.totalorder %s338_s9, 3 }
   0xc   : > { %s487_s16 = scalar_select %p390_p5, 1, 0 }
   0xd   : > { %s488_s17 = scalar_select %p394_p6, 1, 0 }
   0xe   : > { %p484_p9 = scmp.eq.s32.totalorder %s373_s10, 0  ;;  %p401_p10 = pnand %p185_p7, %p67_p8 }
   0xf   : > { %s340_s19 = smov [#allocation2]   ;;  %s244_s24 = scalar_lea.hbm %s482_s0, 128 }
  0x10   : > { %s489_s18 = scalar_select %p401_p10, 1, 0 }
  0x11   : > { %s80_s20 = sshll.u32 %s340_s19, 4  ;;  %p200_p11 = pneg %p401_p10  ;;  %s81_s20 = int_to_ptr.vmem [resolvable:$true] %s80_s20 }
  0x12   : > { %p245_p13 = scmp.ne.s32.totalorder %s482_s0, %s244_s24  ;;  %p251_p3 = scmp.lt.u32.totalorder %s244_s24, %s482_s0 }
  0x13   : > { %p409_p12 = pnand %p484_p9, %p200_p11 }
  0x15   : > { %p246_p0 = pneg %p409_p12 }
  0x17   : > { %p247_p1 = pnand %p246_p0, %p245_p13 }
  0x19   : > { %p248_p2 = pneg %p247_p1 }
  0x1b   : > { %p253_p4 = pnand %p251_p3, %p248_p2 }
  0x1d   : > { %256 = shalt.err (!%p253_p4)
}
  0x1e   : > { %s257_s29 = scalar_lea.vmem %s81_s20, 128  ;;  %p265_p9 = scmp.lt.s32.totalorder %s81_s20, %s81_s20 }
  0x1f   : > { %p258_p7 = scmp.ne.s32.totalorder %s81_s20, %s257_s29  ;;  %p266_p6 = scmp.lt.s32.totalorder %s257_s29, %s257_s29 }
  0x21   : > { %p260_p8 = pnand %p258_p7, %p246_p0  ;;  %p267_p5 = por %p266_p6, %p265_p9 }
  0x23   : > { %p261_p11 = pneg %p260_p8 }
  0x25   : > { %p268_p10 = pnand %p267_p5, %p261_p11 }
  0x27   : > { %271 = shalt.err (!%p268_p10)
}
  0x28   : > { %203 = dma.hbm_to_vmem [thread:$0]  (!%p409_p12), %s482_s0, 128, %s81_s20, [#allocation3]  }
  0x29   : > { %p491_p13 = scmp.ne.s32.totalorder %s489_s18, 0 }
  0x2a   : > { %p492_p1 = scmp.eq.s32.totalorder (!%p491_p13), %s373_s10, 0 }
  0x2b   : > { %93 = sbr.rel (%p491_p13) target bundleno = 77 (0x4d), region = 24 }
  0x32   : > { %317 = dma.done.wait (%p492_p1), [#allocation3], 128   ;;  %p493_p0 = pmov %p492_p1 }
  0x33   : > { %s105_s3 = sand.u32 1, %s330_s7   ;;  %s191_s13 = sshll.u32 %s373_s10, 7  ;;  %v108_v0 = vld [vmem:[#allocation2] sm:$0xff] }
  0x34   : > { %319 = vsyncadd (%p493_p0), [#allocation3], 4294967168  ;;  %s189_s4 = sshll.u32 %s105_s3, 3  ;;  %v109_v1 = vadd.f32 1.0, %v108_v0  ;;  %s442_s19 = scalar_lea.hbm %s483_s1, %s191_s13 }
  0x35   : > { %s107_s5 = scalar_lea.vmem [#allocation5], %s189_s4  ;;  %s112_s20 = scalar_lea.sflag [#allocation4], %s105_s3 }
  0x36   : > { %s125_s11 = sshll.u32 %s107_s5, 4  ;;  %110 = vst [vmem:[%s107_s5] sm:$0xff] %v109_v1  ;;  %p494_p6 = scmp.ne.s32.totalorder %s487_s16, 0  ;;  %s437_s11 = int_to_ptr.vmem [resolvable:$true] %s125_s11 }
  0x37   : > { %s272_s21 = scalar_lea.vmem %s437_s11, 128  ;;  %s341_s10 = smov [#allocation5]  }
  0x38   : > { %p273_p5 = scmp.ne.s32.totalorder %s437_s11, %s272_s21  ;;  %s276_s22 = sshll.u32 %s341_s10, 4  ;;  %s277_s22 = int_to_ptr.vmem [resolvable:$false] %s276_s22 }
  0x39   : > { %s278_s23 = scalar_lea.vmem %s277_s22, 256  ;;  %p279_p12 = scmp.lt.s32.totalorder %s437_s11, %s277_s22 }
  0x3a   : > { %p274_p9 = pnand %p273_p5, %p494_p6  ;;  %p280_p2 = scmp.lt.s32.totalorder %s278_s23, %s272_s21 }
  0x3c   : > { %p275_p10 = pneg %p274_p9  ;;  %p281_p3 = por %p280_p2, %p279_p12 }
  0x3e   : > { %p282_p4 = pnand %p281_p3, %p275_p10 }
  0x40   : > { %285 = shalt.err (!%p282_p4)
}
  0x41   : > { %s286_s24 = scalar_lea.hbm %s442_s19, 128  ;;  %s290_s27 = scalar_lea.hbm %s483_s1, 256 }
  0x42   : > { %p287_p7 = scmp.ne.s32.totalorder %s442_s19, %s286_s24  ;;  %p291_p13 = scmp.lt.u32.totalorder %s442_s19, %s483_s1 }
  0x43   : > { %p292_p1 = scmp.lt.u32.totalorder %s290_s27, %s286_s24  ;;  %p294_p5 = scmp.lt.u32.totalorder %s286_s24, %s442_s19 }
  0x44   : > { %p288_p8 = pnand %p287_p7, %p494_p6 }
  0x45   : > { %p293_p0 = por %p292_p1, %p291_p13 }
  0x46   : > { %p289_p11 = pneg %p288_p8 }
  0x47   : > { %p295_p9 = por %p294_p5, %p293_p0 }
  0x49   : > { %p296_p10 = pnand %p295_p9, %p289_p11 }
  0x4b   : > { %299 = shalt.err (!%p296_p10)
}
  0x4c   : > { %198 = dma.vmem_to_hbm [thread:$0]  (%p494_p6), %s437_s11, 128, %s442_s19, %s112_s20  }
  0x4d PF: > { %p210_p12 = scmp.ge.s32.totalorder %s338_s9, 2  ;;  %s137_s30 = sand.u32 1, %s326_s6  }
  0x4e   : > { %p495_p2 = scmp.ne.s32.totalorder %s488_s17, 0  ;;  %s138_s2 = scalar_lea.sflag [#allocation4], %s137_s30 }
  0x50   : > { %p205_p3 = pnand %p210_p12, %p495_p2 }
  0x52   : > { %321 = dma.done.wait (!%p205_p3), %s138_s2, 128  }
  0x53   : > { %323 = vsyncadd (!%p205_p3), %s138_s2, 4294967168  ;;  %p12_p4 = scmp.ge.s32.totalorder %s377_s12, 4   ;;  %s496_s6 = smov %s330_s7 }
  0x54   : > { %s497_s7 = smov %s334_s8  ;;  %s498_s8 = smov %s388_s15 }
  0x55   : > { %s499_s9 = smov %s377_s12  ;;  %14 = sbr.rel (!%p12_p4) target bundleno = 4 (0x4), region = 61 }
  0x5c   :  { %143 = vsyncpa [#allocation3], 1 }
  0x5d   :  { %145 = vsyncpa [#allocation3 + $0x1], 1 }
  0x5e   :  { %146 = vsyncpa [#allocation4], 1 }
  0x5f   :  { %148 = vsyncpa [#allocation4 + $0x1], 1 }

// kernel: _encoder_forward.2
= control target key start
LH: loop header
LB: loop body
LE: loop exit
PB: predicated region body
PF: predicated region fallthrough
CT: control target
= control target key end

     0   :  { %20 = vsyncpa [#allocation3], 0  ;;  %s2488_s0 = inlined_call_operand.vmem [shape: f32[2,8,32], index: 0, kind: input, shape index: {}, may-alias: {0,13}]   ;;  %s2489_s1 = inlined_call_operand.vmem [shape: f32[1,32], index: 1, kind: input, shape index: {}]   ;;  %s2490_s2 = inlined_call_operand.vmem [shape: f32[1,32], index: 2, kind: input, shape index: {}]   ;;  %s2491_s3 = inlined_call_operand.vmem [shape: bf16[32,96], index: 3, kind: input, shape index: {}]   ;;  %s2492_s4 = inlined_call_operand.vmem [shape: f32[1,96], index: 4, kind: input, shape index: {}]   ;;  %s2493_s5 = inlined_call_operand.vmem [shape: bf16[32,32], index: 5, kind: input, shape index: {}]   ;;  %s2494_s6 = inlined_call_operand.vmem [shape: f32[1,32], index: 6, kind: input, shape index: {}]   ;;  %s2495_s7 = inlined_call_operand.vmem [shape: f32[1,32], index: 7, kind: input, shape index: {}]   ;;  %s2496_s8 = inlined_call_operand.vmem [shape: f32[1,32], index: 8, kind: input, shape index: {}]   ;;  %s2497_s9 = inlined_call_operand.vmem [shape: bf16[32,64], index: 9, kind: input, shape index: {}]   ;;  %s2498_s10 = inlined_call_operand.hbm [shape: f32[1,64], index: 10, kind: input, shape index: {}]   ;;  %s2499_s11 = inlined_call_operand.vmem [shape: bf16[64,32], index: 11, kind: input, shape index: {}]   ;;  %s2500_s12 = inlined_call_operand.vmem [shape: f32[1,32], index: 12, kind: input, shape index: {}]   ;;  %s2501_s13 = inlined_call_operand.vmem [shape: f32[2,8,32], index: 13, kind: output, shape index: {0}, may-alias: {0,13}]   ;;  %s2502_s14 = inlined_call_operand.hbm [shape: bf16[2,2,8,8], index: 14, kind: output, shape index: {1}]  }
   0x1   :  { %21 = vsyncpa [#allocation4], 0 }
   0x2   :  { %23 = vsyncpa [#allocation4 + $0x1], 0  ;;  %s2123_s29 = smov 0   ;;  %s2125_s30 = smov 0  }
   0x3   :  { %s2127_s15 = smov 0   ;;  %s2129_s16 = smov 0  }
   0x4 LB: > { %2512 = sst [smem:[#allocation8_spill]] %s2030_s15  ;;  %s2144_s17 = sadd.s32 4294967295, %s2034_s16   ;;  %s2034_s16 = sphi %s2129_s16, %s2528_s16   ;;  %s2030_s15 = sphi %s2127_s15, %s2530_s15   ;;  %s2026_s30 = sphi %s2125_s30, %s2532_s30   ;;  %s2022_s29 = sphi %s2123_s29, %s2531_s29  }
   0x5   : > { %s1733_s18 = sadd.s32 4294967294, %s2034_s16   ;;  %s2148_s19 = sadd.s32 1, %s2034_s16  }
   0x6   : > { %2513 = sst [smem:[#allocation9_spill]] %s2148_s19  ;;  %s340_s20 = sadd.s32 1, %s2030_s15 }
   0x7   : > { %s337_s21 = ssub.s32 %s2034_s16, %s2148_s19  ;;  %p350_p0 = scmp.ne.s32.totalorder %s2030_s15, %s2026_s30 }
   0x8   : > { %p338_p1 = scmp.eq.s32.totalorder %s337_s21, 0  ;;  %p351_p2 = scmp.eq.s32.totalorder %s2144_s17, 1 }
   0x9   : > { %p356_p3 = scmp.ne.s32.totalorder %s2026_s30, %s2022_s29  ;;  %p357_p4 = scmp.eq.s32.totalorder %s1733_s18, 1 }
   0xa   : > { %s2159_s22 = scalar_select %p338_p1, %s2030_s15, %s340_s20  }
   0xb   : > { %p2161_p5 = por %p351_p2, %p350_p0  ;;  %p2165_p6 = por %p357_p4, %p356_p3 }
   0xc   : > { %2514 = sst [smem:[#allocation10_spill]] %s2159_s22  ;;  %p1734_p7 = scmp.ge.s32.totalorder %s2034_s16, 1 }
   0xd   : > { %s2515_s23 = scalar_select %p2161_p5, 1, 0 }
   0xe   : > { %s2516_s24 = scalar_select %p2165_p6, 1, 0 }
   0xf   : > { %p364_p8 = scmp.lt.s32.totalorder %s2034_s16, 3  ;;  %p2507_p9 = scmp.eq.s32.totalorder %s2144_s17, 0 }
  0x10   : > { %2517 = sst [smem:[#allocation11_spill]] %s2516_s24  ;;  %s2036_s26 = smov [#allocation2]  }
  0x11   : > { %p2172_p10 = pnand %p1734_p7, %p364_p8  ;;  %s404_s27 = sshll.u32 %s2036_s26, 4  ;;  %s405_s27 = int_to_ptr.vmem [resolvable:$true] %s404_s27 }
  0x12   : > { %s1940_s21 = scalar_lea.hbm %s2498_s10, 16 }
  0x13   : > { %s2518_s25 = scalar_select %p2172_p10, 1, 0 }
  0x14   : > { %p1862_p11 = pneg %p2172_p10  ;;  %p1941_p13 = scmp.ne.s32.totalorder %s2498_s10, %s1940_s21 }
  0x15   : > { %p1947_p3 = scmp.lt.u32.totalorder %s1940_s21, %s2498_s10 }
  0x16   : > { %p2180_p12 = pnand %p2507_p9, %p1862_p11 }
  0x18   : > { %p1942_p0 = pneg %p2180_p12 }
  0x1a   : > { %p1943_p1 = pnand %p1942_p0, %p1941_p13 }
  0x1c   : > { %p1944_p2 = pneg %p1943_p1 }
  0x1e   : > { %p1949_p4 = pnand %p1947_p3, %p1944_p2 }
  0x20   : > { %1952 = shalt.err (!%p1949_p4)
}
  0x21   : > { %s1953_s24 = scalar_lea.vmem %s405_s27, 16  ;;  %s1960_s18 = scalar_lea.vmem %s405_s27, 32 }
  0x22   : > { %p1954_p7 = scmp.ne.s32.totalorder %s405_s27, %s1953_s24  ;;  %p1961_p9 = scmp.lt.s32.totalorder %s405_s27, %s405_s27 }
  0x23   : > { %p1962_p6 = scmp.lt.s32.totalorder %s1960_s18, %s1953_s24 }
  0x24   : > { %p1956_p8 = pnand %p1954_p7, %p1942_p0 }
  0x25   : > { %p1963_p5 = por %p1962_p6, %p1961_p9 }
  0x26   : > { %p1957_p11 = pneg %p1956_p8 }
  0x28   : > { %p1964_p10 = pnand %p1963_p5, %p1957_p11 }
  0x2a   : > { %1967 = shalt.err (!%p1964_p10)
}
  0x2b   : > { %1865 = dma.hbm_to_vmem [thread:$0]  (!%p2180_p12), %s2498_s10, 16, %s405_s27, [#allocation3]  }
  0x2c   : > { %p2520_p13 = scmp.ne.s32.totalorder %s2518_s25, 0 }
  0x2d   : > { %p2521_p1 = scmp.eq.s32.totalorder (!%p2520_p13), %s2144_s17, 0 }
  0x2e   : > { %430 = sbr.rel (%p2520_p13) target bundleno = 2736 (0xab0), region = 72 }
  0x35   : > { %2013 = dma.done.wait (%p2521_p1), [#allocation3], 16   ;;  %p2522_p0 = pmov %p2521_p1 }
  0x36   : > { %p479_p6 = scmp.lt.s32.totalorder %s2144_s17, 1  ;;  %vm491_vm0 = vcmask 261120   ;;  %v1916_v7 = vld [vmem:[%s2491_s3] sm:$0xff]   ;;  %v2037_v8 = vmov 0.0   ;;  %vm2038_vm1 = vmmov 0   ;;  %v1917_v9 = vld [vmem:[%s2491_s3 + $0x8] sm:$0xff]   ;;  %v594_v30 = vlaneseq }
  0x37   : > { %2015 = vsyncadd (%p2522_p0), [#allocation3], 4294967280  ;;  %1796 = vmatprep.subr.bf16.mxu0 %v2037_v8  ;;  %1800 = vmatprep.mubr.msk.bf16.mxu0 %vm2038_vm1, %v2037_v8  ;;  %v1742_v14 = vld [vmem:[%s2489_s1] ss:$0 sm:$0xff]  ;;  %s2039_s21 = smov 112   ;;  %s2040_s26 = smov 96  }
  0x38   : > { %s2208_s19 = scalar_select %p479_p6, %s2144_s17, 1  ;;  %1797 = vmatpush3.bf16.msra.mxu0 %v1916_v7  ;;  %1804 = vmatprep.subr.bf16.mxu1 %v2037_v8  ;;  %v1743_v16 = vld [vmem:[%s2490_s2] ss:$0 sm:$0xff]  ;;  %v2041_v28 = vmov 1983009808   ;;  %v595_v32 = vshrl.u32 %v594_v30, 7 }
  0x39   : > { %1798 = vmatprep.subr.bf16.mxu0 %v2037_v8  ;;  %1806 = vmatprep.mubr.msk.bf16.mxu1 %vm2038_vm1, %v2037_v8  ;;  %v1744_v20 = vld [vmem:[%s2492_s4] ss:$0 sm:$0xff]  ;;  %v592_v29 = vunpack.c.l.s4 %v2041_v28  ;;  %v2042_v33 = vmov 1934713408   ;;  %v2043_v39 = vmov 0   ;;  %vm1006_vm2 = vcmask 130048  }
  0x3a   : > { %s2510_s24 = sshll.u32 %s2208_s19, 3  ;;  %v600_v34 = vunpack.c.l.s4 %v2042_v33  ;;  %vm1099_vm3 = vcmask 64512   ;;  %s2511_s18 = smov 64   ;;  %vm1124_vm4 = vcmask 60416   ;;  %vm1130_vm5 = vcmask 1043456  }
  0x3b   : > { %s482_s25 = scalar_lea.vmem %s2488_s0, %s2510_s24  ;;  %v593_v31 = vunpack.c.0.s8 %v592_v29  ;;  %s476_s15 = sand.u32 1, %s2026_s30   ;;  %vm1568_vm6 = vcmask 523264  }
  0x3c   : > { %v2216_v0 = vld [vmem:[%s482_s25] sm:$0xff]  ;;  %1799 = vmatpush3.bf16.msra.mxu0 %v1917_v9  ;;  %v601_v37 = vunpack.c.0.s8 %v600_v34  ;;  %s1739_s22 = sshll.u32 %s476_s15, 3  ;;  %s1773_s24 = sshll.u32 %s2144_s17, 7 }
  0x3d   : > { %v492_v1 = vsel %vm491_vm0, %v2216_v0, 0.0  ;;  %1810 = vmatprep.subr.bf16.mxu0 %v2037_v8  ;;  %v2255_v35 = vsub.s32 %v593_v31, %v595_v32  ;;  %s2335_s28 = scalar_lea.vmem [#allocation5], %s1739_s22  ;;  %s2428_s27 = scalar_lea.hbm %s2502_s14, %s1773_s24 }
  0x3e   : > { %493 = vadd.xlane.f32.xlu0 %v492_v1  ;;  %v2262_v42 = vsub.s32 %v601_v37, %v595_v32  ;;  %s1635_s25 = sshll.u32 %s2335_s28, 4  ;;  %s2435_s20 = scalar_lea.sflag [#allocation4], %s476_s15  ;;  %s2431_s25 = int_to_ptr.vmem [resolvable:$true] %s1635_s25 }
  0x3f   : > { %p2523_p9 = scmp.ne.s32.totalorder %s2515_s23, 0  ;;  %s2046_s17 = smov [#allocation5]  }
  0xcb   : > { %v494_v2 = vpop.xlane.xlu0 %493 }
  0xcc   : > { %v496_v3 = vmul.f32 0.03125, %v494_v2 }
  0xce   : > { %v497_v4 = vsub.f32 %v2216_v0, %v496_v3 }
  0xd0   : > { %v498_v5 = vmul.f32 %v497_v4, %v497_v4 }
  0xd2   : > { %v499_v6 = vsel %vm491_vm0, %v498_v5, 0.0 }
  0xd3   : > { %500 = vadd.xlane.f32.xlu0 %v499_v6 }
 0x160   : > { %v501_v10 = vpop.xlane.xlu0 %500 }
 0x161   : > { %v502_v11 = vmul.f32 0.03125, %v501_v10 }
 0x163   : > { %v503_v12 = vadd.f32 1e-12, %v502_v11 }
 0x165   : > { %1926 = vrsqrt.f32 %v503_v12 }
 0x16f   : > { %v1927_v13 = vpop.eup %1926 }
 0x170   : > { %v505_v15 = vmul.f32 %v1927_v13, %v497_v4 }
 0x172   : > { %v512_v17 = vmul.f32 %v1742_v14, %v505_v15 }
 0x174   : > { %v519_v18 = vadd.f32 %v1743_v16, %v512_v17 }
 0x176   : > { %v520_v19 = vpack.c.bf16 %v519_v18, %v519_v18 }
 0x178   : > { %1801 = vmatmul.mubr.msk.bf16.vlgmr.msra.gmra.mrb[0].mxu0 %vm491_vm0, %v520_v19 }
 0x179   : > { %1812 = vmatprep.mubr.msk.bf16.mxu0 %vm2038_vm1, %v2037_v8 }
 0x24b   : > { %v581_v21 = vpop.f32.mrb[0].mxu0 }
 0x24c   : > { %v582_v22 = vadd.f32 %v1744_v20, %v581_v21  ;;  %v1802_v23 = vpop.f32.mrb[1].mxu0 }
 0x24d   : > { %v584_v24 = vpop.f32.mrb[2].mxu0 }
 0x24e   : > { %v2248_v25 = vpack.c.bf16 %v582_v22, %v582_v22  ;;  %v1803_v26 = vpop.f32.mrb[3].mxu0 }
 0x250   : > { %589 = vrot.lane.b32.xlu1 %v2248_v25, %s2039_s21  ;;  %v597_v38 = vrot.slane %v2248_v25, %v2255_v35  ;;  %s1968_s21 = scalar_lea.vmem %s2431_s25, 128 }
 0x251   : > { %p1969_p5 = scmp.ne.s32.totalorder %s2431_s25, %s1968_s21 }
 0x252   : > { %v598_v43 = vcombine.high %v597_v38, %v2043_v39  ;;  %v605_v47 = vrot.slane %v597_v38, %v2262_v42 }
 0x253   : > { %p1970_p10 = pnand %p1969_p5, %p2523_p9 }
 0x254   : > { %726 = vrot.lane.b32.xlu1 %v2248_v25, %s2040_s26  ;;  %v612_v48 = vrot.slane %v598_v43, %v2262_v42  ;;  %v613_v52 = vcombine.high %v605_v47, %v2043_v39  ;;  %v644_v60 = vshrl.u32 %v605_v47, 16 }
 0x255   : > { %p1971_p12 = pneg %p1970_p10 }
 0x256   : > { %v614_v54 = vcombine.high %v612_v48, %v2043_v39  ;;  %v652_v63 = vshrl.u32 %v613_v52, 16  ;;  %v660_v6 = vshrl.u32 %v612_v48, 16 }
 0x258   : > { %v668_v7 = vshrl.u32 %v614_v54, 16 }
 0x2c2   : > { %v2252_v27 = vpop.permute.xlu1 %589 }
 0x2c3   : > { %728 = vrot.lane.b32.xlu0 %v2252_v27, %s2040_s26  ;;  %v622_v36 = vrot.slane %v2252_v27, %v2255_v35  ;;  %s2045_s26 = smov 16  }
 0x2c5   : > { %v623_v40 = vcombine.high %v622_v36, %v2043_v39  ;;  %v2266_v44 = vrot.slane %v622_v36, %v2262_v42 }
 0x2c6   : > { %v727_v41 = vpop.permute.xlu1 %726 }
 0x2c7   : > { %v737_v45 = vrot.slane %v727_v41, %v2255_v35  ;;  %v637_v46 = vrot.slane %v623_v40, %v2262_v42  ;;  %v638_v49 = vcombine.high %v2266_v44, %v2043_v39  ;;  %v645_v55 = vshrl.u32 %v2266_v44, 16 }
 0x2c8   : > { %v642_v41 = vpack.i.b16 %v2266_v44, %v605_v47 }
 0x2c9   : > { %v738_v50 = vcombine.high %v737_v45, %v2043_v39  ;;  %v639_v51 = vcombine.high %v637_v46, %v2043_v39  ;;  %v745_v53 = vrot.slane %v737_v45, %v2262_v42  ;;  %v653_v57 = vshrl.u32 %v638_v49, 16 }
 0x2ca   : > { %v661_v61 = vshrl.u32 %v637_v46, 16  ;;  %v646_v4 = vpack.i.b16 %v645_v55, %v644_v60  ;;  %v650_v5 = vpack.i.b16 %v638_v49, %v613_v52  ;;  %v658_v31 = vpack.i.b16 %v637_v46, %v612_v48 }
 0x2cb   : > { %v752_v58 = vrot.slane %v738_v50, %v2262_v42  ;;  %v669_v62 = vshrl.u32 %v639_v51, 16  ;;  %v753_v1 = vcombine.high %v745_v53, %v2043_v39  ;;  %v654_v9 = vpack.i.b16 %v653_v57, %v652_v63 }
 0x2cc   : > { %v662_v13 = vpack.i.b16 %v661_v61, %v660_v6  ;;  %v666_v14 = vpack.i.b16 %v639_v51, %v614_v54  ;;  %v784_v17 = vshrl.u32 %v745_v53, 16 }
 0x2cd   : > { %v754_v10 = vcombine.high %v752_v58, %v2043_v39  ;;  %v670_v15 = vpack.i.b16 %v669_v62, %v668_v7  ;;  %v792_v18 = vshrl.u32 %v753_v1, 16  ;;  %v800_v21 = vshrl.u32 %v752_v58, 16 }
 0x2ce   : > { %v680_v43 = vcombine.low %v650_v5, %v666_v14  ;;  %v696_v49 = vcombine.low %v646_v4, %v662_v13 }
 0x2cf   : > { %v808_v26 = vshrl.u32 %v754_v10, 16  ;;  %v704_v40 = vcombine.low %v654_v9, %v670_v15 }
 0x2d0   : > { %v687_v44 = vrot.slane %v680_v43, %v2255_v35  ;;  %v703_v47 = vrot.slane %v696_v49, %v2255_v35 }
 0x2d1   : > { %v711_v55 = vrot.slane %v704_v40, %v2255_v35 }
 0x2d3   : > { %v712_v60 = vcombine.low %v703_v47, %v711_v55 }
 0x2d5   : > { %v719_v4 = vrot.slane %v712_v60, %v2262_v42 }
 0x2d7   : > { %v724_v7 = vshrl.u32 %v719_v4, 16 }
 0x335   : > { %v729_v56 = vpop.permute.xlu0 %728 }
 0x336   : > { %v762_v59 = vrot.slane %v729_v56, %v2255_v35 }
 0x338   : > { %v763_v2 = vcombine.high %v762_v59, %v2043_v39  ;;  %v770_v3 = vrot.slane %v762_v59, %v2262_v42 }
 0x33a   : > { %v777_v11 = vrot.slane %v763_v2, %v2262_v42  ;;  %v778_v12 = vcombine.high %v770_v3, %v2043_v39  ;;  %v785_v16 = vshrl.u32 %v770_v3, 16  ;;  %v782_v22 = vpack.i.b16 %v770_v3, %v745_v53 }
 0x33b   : > { %v672_v53 = vcombine.low %v642_v41, %v658_v31 }
 0x33c   : > { %v779_v19 = vcombine.high %v777_v11, %v2043_v39  ;;  %v793_v20 = vshrl.u32 %v778_v12, 16  ;;  %v798_v23 = vpack.i.b16 %v777_v11, %v752_v58  ;;  %v801_v24 = vshrl.u32 %v777_v11, 16 }
 0x33d   : > { %v790_v28 = vpack.i.b16 %v778_v12, %v753_v1  ;;  %v786_v32 = vpack.i.b16 %v785_v16, %v784_v17  ;;  %v679_v59 = vrot.slane %v672_v53, %v2255_v35 }
 0x33e   : > { %v806_v29 = vpack.i.b16 %v779_v19, %v754_v10  ;;  %v809_v30 = vshrl.u32 %v779_v19, 16  ;;  %v802_v33 = vpack.i.b16 %v801_v24, %v800_v21  ;;  %v812_v34 = vcombine.low %v782_v22, %v798_v23 }
 0x33f   : > { %v794_v36 = vpack.i.b16 %v793_v20, %v792_v18  ;;  %v688_v1 = vcombine.low %v679_v59, %v687_v44 }
 0x340   : > { %v810_v37 = vpack.i.b16 %v809_v30, %v808_v26  ;;  %v820_v38 = vcombine.low %v790_v28, %v806_v29  ;;  %v836_v45 = vcombine.low %v786_v32, %v802_v33  ;;  %v819_v50 = vrot.slane %v812_v34, %v2255_v35 }
 0x341   : > { %v695_v6 = vrot.slane %v688_v1, %v2262_v42 }
 0x342   : > { %v827_v51 = vrot.slane %v820_v38, %v2255_v35  ;;  %v844_v52 = vcombine.low %v794_v36, %v810_v37  ;;  %v843_v46 = vrot.slane %v836_v45, %v2255_v35 }
 0x343   : > { %v722_v9 = vpack.i.b16 %v719_v4, %v695_v6  ;;  %v723_v10 = vshrl.u32 %v695_v6, 16 }
 0x344   : > { %v828_v54 = vcombine.low %v819_v50, %v827_v51  ;;  %v851_v48 = vrot.slane %v844_v52, %v2255_v35 }
 0x345   : > { %v725_v11 = vpack.i.b16 %v724_v7, %v723_v10 }
 0x346   : > { %v835_v56 = vrot.slane %v828_v54, %v2262_v42  ;;  %v852_v57 = vcombine.low %v843_v46, %v851_v48 }
 0x348   : > { %v859_v58 = vrot.slane %v852_v57, %v2262_v42  ;;  %v863_v62 = vshrl.u32 %v835_v56, 16 }
 0x34a   : > { %v862_v61 = vpack.i.b16 %v859_v58, %v835_v56  ;;  %v864_v63 = vshrl.u32 %v859_v58, 16 }
 0x34c   : > { %v1011_v2 = vsel %vm1006_vm2, %v862_v61, 0  ;;  %v865_v3 = vpack.i.b16 %v864_v63, %v863_v62 }
 0x34d   : > { %1805 = vmatpush3.bf16.xpose.msra.mxu1 %v1011_v2 }
 0x34e   : > { %v1057_v5 = vsel %vm1006_vm2, %v865_v3, 0  ;;  %1816 = vmatprep.subr.bf16.mxu1 %v2037_v8 }
 0x34f   : > { %1811 = vmatpush3.bf16.xpose.msra.mxu0 %v1057_v5 }
 0x350   : > { %1822 = vmatprep.subr.bf16.mxu0 %v2037_v8 }
 0x354   : > { %1807 = vmatmul.mubr.msk.bf16.vlgmr.msra.gmra.mrb[0].mxu1 %vm1006_vm2, %v722_v9 }
 0x355   : > { %1818 = vmatprep.mubr.msk.bf16.mxu1 %vm2038_vm1, %v2037_v8 }
 0x356   : > { %1813 = vmatmul.mubr.msk.bf16.vlgmr.msra.gmra.mrb[4].mxu0 %vm1006_vm2, %v725_v11 }
 0x357   : > { %1824 = vmatprep.mubr.msk.bf16.mxu0 %vm2038_vm1, %v2037_v8 }
 0x427   : > { %v1047_v12 = vpop.f32.mrb[0].mxu1 }
 0x428   : > { %v1808_v13 = vpop.f32.mrb[1].mxu1  ;;  %v1100_v14 = vsel %vm1099_vm3, %v1047_v12, -inf }
 0x429   : > { %1101 = vmax.xlane.f32.xlu1 %v1100_v14  ;;  %v1050_v15 = vpop.f32.mrb[2].mxu1  ;;  %v1093_v16 = vpop.f32.mrb[4].mxu0 }
 0x42a   : > { %v1809_v17 = vpop.f32.mrb[3].mxu1  ;;  %v1814_v18 = vpop.f32.mrb[5].mxu0  ;;  %v1103_v19 = vsel %vm1099_vm3, %v1093_v16, -inf }
 0x42b   : > { %1104 = vmax.xlane.f32.xlu0 %v1103_v19  ;;  %v1096_v20 = vpop.f32.mrb[6].mxu0 }
 0x42c   : > { %v1815_v21 = vpop.f32.mrb[7].mxu0 }
 0x441   : > { %868 = vrot.lane.b32.xlu0 %v2252_v27, %s2511_s18 }
 0x4b6   : > { %v1102_v22 = vpop.xlane.xlu1 %1101 }
 0x4b7   : > { %v1106_v23 = vsub.f32 %v1047_v12, %v1102_v22 }
 0x4b8   : > { %v1105_v24 = vpop.xlane.xlu0 %1104 }
 0x4b9   : > { %v1108_v26 = vmul.f32 1.442695, %v1106_v23  ;;  %v1107_v28 = vsub.f32 %v1093_v16, %v1105_v24 }
 0x4bb   : > { %1928 = vpow2.f32 %v1108_v26  ;;  %v1110_v29 = vmul.f32 1.442695, %v1107_v28 }
 0x4bc   : > { %v869_v27 = vpop.permute.xlu0 %868 }
 0x4bd   : > { %1930 = vpow2.f32 %v1110_v29  ;;  %v902_v36 = vrot.slane %v869_v27, %v2255_v35 }
 0x4bf   : > { %v903_v38 = vcombine.high %v902_v36, %v2043_v39  ;;  %v910_v40 = vrot.slane %v902_v36, %v2262_v42 }
 0x4c1   : > { %v917_v43 = vrot.slane %v903_v38, %v2262_v42  ;;  %v918_v49 = vcombine.high %v910_v40, %v2043_v39  ;;  %v925_v48 = vshrl.u32 %v910_v40, 16 }
 0x4c3   : > { %v919_v53 = vcombine.high %v917_v43, %v2043_v39  ;;  %v933_v44 = vshrl.u32 %v918_v49, 16  ;;  %v941_v47 = vshrl.u32 %v917_v43, 16 }
 0x4c5   : > { %v1929_v30 = vpop.eup %1928  ;;  %v949_v1 = vshrl.u32 %v919_v53, 16 }
 0x4c6   : > { %v1112_v31 = vsel %vm1099_vm3, %v1929_v30, 0.0 }
 0x4c7   : > { %v1931_v32 = vpop.eup %1930  ;;  %1113 = vadd.xlane.f32.xlu1 %v1112_v31  ;;  %v1918_v31 = vld [vmem:[%s2493_s5] sm:$0xff]  }
 0x4c8   : > { %v1115_v33 = vsel %vm1099_vm3, %v1931_v32, 0.0 }
 0x4cb   : > { %1116 = vadd.xlane.f32.xlu1 %v1115_v33 }
 0x4dc   : > { %866 = vrot.lane.b32.xlu1 %v2248_v25, %s2511_s18  ;;  %s1972_s18 = sshll.u32 %s2046_s17, 4  ;;  %s1973_s18 = int_to_ptr.vmem [resolvable:$false] %s1972_s18 }
 0x4dd   : > { %p1975_p2 = scmp.lt.s32.totalorder %s2431_s25, %s1973_s18 }
 0x554   : > { %v1114_v34 = vpop.xlane.xlu1 %1113 }
 0x555   : > { %1932 = vrcp.f32 %v1114_v34 }
 0x558   : > { %v1117_v37 = vpop.xlane.xlu1 %1116 }
 0x559   : > { %1934 = vrcp.f32 %v1117_v37 }
 0x55c   : > { %v867_v41 = vpop.permute.xlu1 %866 }
 0x55d   : > { %v877_v45 = vrot.slane %v867_v41, %v2255_v35 }
 0x55f   : > { %v1933_v25 = vpop.eup %1932  ;;  %v878_v50 = vcombine.high %v877_v45, %v2043_v39  ;;  %v885_v51 = vrot.slane %v877_v45, %v2262_v42 }
 0x560   : > { %v1119_v52 = vmul.f32 %v1933_v25, %v1929_v30 }
 0x561   : > { %v892_v54 = vrot.slane %v878_v50, %v2262_v42  ;;  %v893_v46 = vcombine.high %v885_v51, %v2043_v39  ;;  %v924_v55 = vshrl.u32 %v885_v51, 16  ;;  %v922_v61 = vpack.i.b16 %v910_v40, %v885_v51 }
 0x562   : > { %v1122_v56 = vpack.c.bf16 %v1119_v52, %v1119_v52 }
 0x563   : > { %v1935_v57 = vpop.eup %1934  ;;  %v894_v58 = vcombine.high %v892_v54, %v2043_v39  ;;  %v932_v59 = vshrl.u32 %v893_v46, 16  ;;  %v938_v62 = vpack.i.b16 %v917_v43, %v892_v54  ;;  %v940_v63 = vshrl.u32 %v892_v54, 16 }
 0x564   : > { %v1121_v60 = vmul.f32 %v1935_v57, %v1931_v32  ;;  %1125 = vst.msk [vmem:[%s2335_s28] sm:$0xf] %vm1124_vm4, %v1122_v56  ;;  %v930_v2 = vpack.i.b16 %v918_v49, %v893_v46  ;;  %v926_v5 = vpack.i.b16 %v925_v48, %v924_v55  ;;  %v1919_v32 = vld [vmem:[%s2493_s5 + $0x8] sm:$0xff]  }
 0x565   : > { %v946_v3 = vpack.i.b16 %v919_v53, %v894_v58  ;;  %v948_v4 = vshrl.u32 %v894_v58, 16  ;;  %v942_v6 = vpack.i.b16 %v941_v47, %v940_v63  ;;  %v952_v7 = vcombine.low %v922_v61, %v938_v62 }
 0x566   : > { %v1123_v9 = vpack.c.bf16 %v1121_v60, %v1121_v60  ;;  %v934_v10 = vpack.i.b16 %v933_v44, %v932_v59 }
 0x567   : > { %v950_v11 = vpack.i.b16 %v949_v1, %v948_v4  ;;  %v960_v12 = vcombine.low %v930_v2, %v946_v3  ;;  %v976_v13 = vcombine.low %v926_v5, %v942_v6  ;;  %v959_v14 = vrot.slane %v952_v7, %v2255_v35 }
 0x568   : > { %1126 = vst.msk [vmem:[%s2335_s28 + $0x4] sm:$0xf] %vm1124_vm4, %v1123_v9 }
 0x569   : > { %v984_v15 = vcombine.low %v934_v10, %v950_v11  ;;  %v967_v16 = vrot.slane %v960_v12, %v2255_v35  ;;  %v983_v18 = vrot.slane %v976_v13, %v2255_v35 }
 0x56b   : > { %v968_v17 = vcombine.low %v959_v14, %v967_v16  ;;  %v991_v19 = vrot.slane %v984_v15, %v2255_v35 }
 0x56d   : > { %v975_v20 = vrot.slane %v968_v17, %v2262_v42  ;;  %v992_v21 = vcombine.low %v983_v18, %v991_v19 }
 0x56f   : > { %v999_v22 = vrot.slane %v992_v21, %v2262_v42  ;;  %v1003_v24 = vshrl.u32 %v975_v20, 16 }
 0x571   : > { %v1002_v23 = vpack.i.b16 %v999_v22, %v975_v20  ;;  %v1004_v26 = vshrl.u32 %v999_v22, 16 }
 0x573   : > { %v1132_v28 = vsel %vm1130_vm5, %v1002_v23, 0  ;;  %v1005_v29 = vpack.i.b16 %v1004_v26, %v1003_v24 }
 0x574   : > { %1817 = vmatpush3.bf16.msra.mxu1 %v1132_v28 }
 0x575   : > { %v1178_v30 = vsel %vm1130_vm5, %v1005_v29, 0  ;;  %1828 = vmatprep.subr.bf16.mxu1 %v2037_v8 }
 0x576   : > { %1823 = vmatpush3.bf16.msra.mxu0 %v1178_v30 }
 0x577   : > { %1819 = vmatmul.mubr.msk.bf16.vlgmr.msra.gmra.mrb[4].mxu1 %vm1099_vm3, %v1122_v56  ;;  %1836 = vmatprep.subr.bf16.mxu0 %v2037_v8 }
 0x578   : > { %1832 = vmatprep.mubr.msk.bf16.mxu1 %vm2038_vm1, %v2037_v8  ;;  %1829 = vmatpush3.bf16.msra.mxu1 %v1918_v31 }
 0x579   : > { %1825 = vmatmul.mubr.msk.bf16.vlgmr.msra.gmra.mrb[8].mxu0 %vm1099_vm3, %v1123_v9  ;;  %1830 = vmatprep.subr.bf16.mxu1 %v2037_v8 }
 0x57a   : > { %1840 = vmatprep.mubr.msk.bf16.mxu0 %vm2038_vm1, %v2037_v8 }
 0x57c   : > { %1831 = vmatpush3.bf16.msra.mxu1 %v1919_v32 }
 0x57d   : > { %1844 = vmatprep.subr.bf16.mxu1 %v2037_v8 }
 0x64a   : > { %v1168_v33 = vpop.f32.mrb[4].mxu1 }
 0x64b   : > { %v1220_v27 = vpack.c.bf16 %v1168_v33, %v1168_v33  ;;  %v1820_v34 = vpop.f32.mrb[5].mxu1 }
 0x64c   : > { %v1171_v36 = vpop.f32.mrb[6].mxu1  ;;  %v1214_v37 = vpop.f32.mrb[8].mxu0 }
 0x64d   : > { %v1227_v38 = vrot.slane %v1220_v27, %v2255_v35  ;;  %v1245_v40 = vpack.c.bf16 %v1214_v37, %v1214_v37  ;;  %v1821_v41 = vpop.f32.mrb[7].mxu1  ;;  %v1826_v43 = vpop.f32.mrb[9].mxu0 }
 0x64e   : > { %v1217_v45 = vpop.f32.mrb[10].mxu0  ;;  %v1920_v41 = vld [vmem:[%s2497_s9] sm:$0xff]  }
 0x64f   : > { %v1228_v25 = vcombine.high %v1227_v38, %v2043_v39  ;;  %v1235_v49 = vrot.slane %v1227_v38, %v2262_v42  ;;  %v1252_v50 = vrot.slane %v1245_v40, %v2255_v35  ;;  %v1827_v51 = vpop.f32.mrb[11].mxu0  ;;  %1837 = vmatpush3.bf16.msra.mxu0 %v1920_v41 }
 0x650   : > { %1838 = vmatprep.subr.bf16.mxu0 %v2037_v8 }
 0x651   : > { %v1242_v52 = vrot.slane %v1228_v25, %v2262_v42  ;;  %v1243_v53 = vcombine.high %v1235_v49, %v2043_v39  ;;  %v1253_v54 = vcombine.high %v1252_v50, %v2043_v39  ;;  %v1260_v46 = vrot.slane %v1252_v50, %v2262_v42  ;;  %v1756_v50 = vld [vmem:[%s2495_s7] ss:$0 sm:$0xff] }
 0x652   : > { %v1274_v55 = vshrl.u32 %v1235_v49, 16 }
 0x653   : > { %v1244_v48 = vcombine.high %v1242_v52, %v2043_v39  ;;  %v1267_v56 = vrot.slane %v1253_v54, %v2262_v42  ;;  %v1282_v57 = vshrl.u32 %v1243_v53, 16  ;;  %v1268_v44 = vcombine.high %v1260_v46, %v2043_v39 }
 0x654   : > { %v1272_v47 = vpack.i.b16 %v1260_v46, %v1235_v49  ;;  %v1275_v58 = vshrl.u32 %v1260_v46, 16  ;;  %v1290_v59 = vshrl.u32 %v1242_v52, 16 }
 0x655   : > { %v1269_v60 = vcombine.high %v1267_v56, %v2043_v39  ;;  %v1288_v61 = vpack.i.b16 %v1267_v56, %v1242_v52  ;;  %v1291_v62 = vshrl.u32 %v1267_v56, 16  ;;  %v1298_v63 = vshrl.u32 %v1244_v48, 16  ;;  %v1757_v52 = vld [vmem:[%s2496_s8] ss:$0 sm:$0xff]  ;;  %v1924_v56 = vld [vmem:[%s2499_s11 + $0x10] sm:$0xff]  }
 0x656   : > { %v1276_v1 = vpack.i.b16 %v1275_v58, %v1274_v55  ;;  %v1280_v2 = vpack.i.b16 %v1268_v44, %v1243_v53  ;;  %v1283_v3 = vshrl.u32 %v1268_v44, 16  ;;  %v1923_v55 = vld [vmem:[%s2499_s11 + $0x8] sm:$0xff]   ;;  %v1758_v44 = vld [vmem:[#allocation2] ss:$0 sm:$0xff] }
 0x657   : > { %v1292_v4 = vpack.i.b16 %v1291_v62, %v1290_v59  ;;  %v1296_v5 = vpack.i.b16 %v1269_v60, %v1244_v48  ;;  %v1299_v6 = vshrl.u32 %v1269_v60, 16  ;;  %v1302_v7 = vcombine.low %v1272_v47, %v1288_v61  ;;  %v1922_v48 = vld [vmem:[%s2499_s11] sm:$0xff]  }
 0x658   : > { %v1284_v9 = vpack.i.b16 %v1283_v3, %v1282_v57  ;;  %v1925_v57 = vld [vmem:[%s2499_s11 + $0x18] sm:$0xff]  }
 0x659   : > { %v1300_v10 = vpack.i.b16 %v1299_v6, %v1298_v63  ;;  %v1310_v11 = vcombine.low %v1280_v2, %v1296_v5  ;;  %v1326_v12 = vcombine.low %v1276_v1, %v1292_v4  ;;  %v1309_v13 = vrot.slane %v1302_v7, %v2255_v35 }
 0x65b   : > { %v1317_v14 = vrot.slane %v1310_v11, %v2255_v35  ;;  %v1334_v15 = vcombine.low %v1284_v9, %v1300_v10  ;;  %v1333_v16 = vrot.slane %v1326_v12, %v2255_v35 }
 0x65d   : > { %v1318_v39 = vcombine.low %v1309_v13, %v1317_v14  ;;  %v1341_v17 = vrot.slane %v1334_v15, %v2255_v35  ;;  %v1752_v35 = vld [vmem:[%s2494_s6] ss:$0 sm:$0xff] }
 0x65f   : > { %v1325_v18 = vrot.slane %v1318_v39, %v2262_v42  ;;  %v1342_v19 = vcombine.low %v1333_v16, %v1341_v17 }
 0x661   : > { %v1349_v20 = vrot.slane %v1342_v19, %v2262_v42  ;;  %v1353_v21 = vshrl.u32 %v1325_v18, 16 }
 0x663   : > { %v1354_v22 = vshrl.u32 %v1349_v20, 16  ;;  %v1352_v23 = vpack.i.b16 %v1349_v20, %v1325_v18 }
 0x665   : > { %v1355_v24 = vpack.i.b16 %v1354_v22, %v1353_v21 }
 0x667   : > { %1356 = vrot.lane.b32.xlu1 %v1355_v24, %s2045_s26  ;;  %s1974_s26 = scalar_lea.vmem %s1973_s18, 256 }
 0x668   : > { %p1976_p3 = scmp.lt.s32.totalorder %s1974_s26, %s1968_s21 }
 0x66a   : > { %p1977_p4 = por %p1976_p3, %p1975_p2 }
 0x66c   : > { %p1978_p7 = pnand %p1977_p4, %p1971_p12 }
 0x6d9   : > { %v1357_v26 = vpop.permute.xlu1 %1356 }
 0x6da   : > { %v1360_v28 = vsel %vm1006_vm2, %v1352_v23, %v1357_v26 }
 0x6db   : > { %1833 = vmatmul.mubr.msk.bf16.vlgmr.msra.gmra.mrb[8].mxu1 %vm491_vm0, %v1360_v28 }
 0x6dc   : > { %1852 = vmatprep.mubr.msk.bf16.mxu1 %vm2038_vm1, %v2037_v8  ;;  %1845 = vmatpush3.bf16.msra.mxu1 %v1922_v48 }
 0x6dd   : > { %1846 = vmatprep.subr.bf16.mxu1 %v2037_v8 }
 0x6e0   : > { %1847 = vmatpush3.bf16.msra.mxu1 %v1923_v55 }
 0x6e1   : > { %1848 = vmatprep.subr.bf16.mxu1 %v2037_v8 }
 0x6e4   : > { %1849 = vmatpush3.bf16.msra.mxu1 %v1924_v56 }
 0x6e5   : > { %1850 = vmatprep.subr.bf16.mxu1 %v2037_v8 }
 0x6e8   : > { %1851 = vmatpush3.bf16.msra.mxu1 %v1925_v57 }
 0x7ae   : > { %v1420_v29 = vpop.f32.mrb[8].mxu1 }
 0x7af   : > { %v1421_v42 = vadd.f32 %v1752_v35, %v1420_v29  ;;  %v1834_v30 = vpop.f32.mrb[9].mxu1 }
 0x7b0   : > { %v1423_v31 = vpop.f32.mrb[10].mxu1 }
 0x7b1   : > { %v2389_v32 = vadd.f32 %v1421_v42, %v2216_v0  ;;  %v1835_v33 = vpop.f32.mrb[11].mxu1  ;;  %v1921_v0 = vld [vmem:[%s2497_s9 + $0x8] sm:$0xff]  }
 0x7b2   : > { %1839 = vmatpush3.bf16.msra.mxu0 %v1921_v0 }
 0x7b3   : > { %v1429_v27 = vsel %vm491_vm0, %v2389_v32, 0.0 }
 0x7b4   : > { %1430 = vadd.xlane.f32.xlu1 %v1429_v27 }
 0x841   : > { %v1431_v34 = vpop.xlane.xlu1 %1430 }
 0x842   : > { %v1432_v36 = vmul.f32 0.03125, %v1431_v34 }
 0x844   : > { %v1433_v37 = vsub.f32 %v2389_v32, %v1432_v36 }
 0x846   : > { %v1434_v38 = vmul.f32 %v1433_v37, %v1433_v37 }
 0x848   : > { %v1435_v40 = vsel %vm491_vm0, %v1434_v38, 0.0 }
 0x849   : > { %1436 = vadd.xlane.f32.xlu0 %v1435_v40 }
 0x8d6   : > { %v1437_v43 = vpop.xlane.xlu0 %1436 }
 0x8d7   : > { %v1438_v45 = vmul.f32 0.03125, %v1437_v43 }
 0x8d9   : > { %v1439_v25 = vadd.f32 1e-12, %v1438_v45 }
 0x8db   : > { %1936 = vrsqrt.f32 %v1439_v25 }
 0x8e5   : > { %v1937_v49 = vpop.eup %1936 }
 0x8e6   : > { %v1441_v51 = vmul.f32 %v1937_v49, %v1433_v37 }
 0x8e8   : > { %v1448_v53 = vmul.f32 %v1756_v50, %v1441_v51 }
 0x8ea   : > { %v1455_v54 = vadd.f32 %v1757_v52, %v1448_v53 }
 0x8ec   : > { %v1456_v46 = vpack.c.bf16 %v1455_v54, %v1455_v54 }
 0x8ee   : > { %1841 = vmatmul.mubr.msk.bf16.vlgmr.msra.gmra.mrb[12].mxu0 %vm491_vm0, %v1456_v46 }
 0x9c1   : > { %v1517_v47 = vpop.f32.mrb[12].mxu0 }
 0x9c2   : > { %v1518_v58 = vadd.f32 %v1758_v44, %v1517_v47  ;;  %v1842_v59 = vpop.f32.mrb[13].mxu0 }
 0x9c3   : > { %v1520_v60 = vpop.f32.mrb[14].mxu0 }
 0x9c4   : > { %v1524_v61 = vmul.f32 0.70710677, %v1518_v58  ;;  %v1843_v62 = vpop.f32.mrb[15].mxu0  ;;  %v1523_v1 = vmul.f32 0.5, %v1518_v58 }
 0x9c6   : > { %1938 = verf.f32 %v1524_v61 }
 0x9d0   : > { %v1939_v63 = vpop.eup %1938 }
 0x9d1   : > { %v1526_v8 = vadd.f32 1.0, %v1939_v63 }
 0x9d3   : > { %v1527_v2 = vmul.f32 %v1526_v8, %v1523_v1 }
 0x9d5   : > { %v1528_v3 = vpack.c.bf16 %v1527_v2, %v1527_v2 }
 0x9d7   : > { %1853 = vmatmul.mubr.msk.bf16.vlgmr.msra.gmra.mrb[12].mxu1 %vm1568_vm6, %v1528_v3 }
 0x9d8   : > { %1981 = shalt.err (!%p1978_p7)
}
 0x9d9   : > { %s1982_s15 = scalar_lea.hbm %s2428_s27, 128  ;;  %s1986_s22 = scalar_lea.hbm %s2502_s14, 256 }
 0x9da   : > { %p1983_p8 = scmp.ne.s32.totalorder %s2428_s27, %s1982_s15  ;;  %p1987_p1 = scmp.lt.u32.totalorder %s2428_s27, %s2502_s14 }
 0x9db   : > { %p1988_p0 = scmp.lt.u32.totalorder %s1986_s22, %s1982_s15  ;;  %p1990_p5 = scmp.lt.u32.totalorder %s1982_s15, %s2428_s27 }
 0x9dc   : > { %p1984_p11 = pnand %p1983_p8, %p2523_p9 }
 0x9dd   : > { %p1989_p6 = por %p1988_p0, %p1987_p1 }
 0x9de   : > { %p1985_p13 = pneg %p1984_p11 }
 0x9df   : > { %p1991_p10 = por %p1990_p5, %p1989_p6 }
 0x9e1   : > { %p1992_p12 = pnand %p1991_p10, %p1985_p13 }
 0x9e3   : > { %1995 = shalt.err (!%p1992_p12)
}
 0x9e4   : > { %s2047_s21 = smov 4   ;;  %s2524_s26 = smov 64   ;;  %v1762_v4 = vld [vmem:[%s2500_s12] ss:$0 sm:$0xff] }
 0x9e5   : > { %1860 = dma.vmem_to_hbm [thread:$0]  (%p2523_p9), %s2431_s25, 128, %s2428_s27, %s2435_s20, %s2524_s26, %s2524_s26, %s2047_s21  }
 0x9e6   : > { %s2525_s15 = sshll.u32 %s2208_s19, 3 }
 0x9e7   : > { %s486_s18 = scalar_lea.vmem %s2501_s13, %s2525_s15 }
 0xaaa   : > { %v1606_v5 = vpop.f32.mrb[12].mxu1 }
 0xaab   : > { %v1607_v6 = vadd.f32 %v1762_v4, %v1606_v5  ;;  %v1854_v7 = vpop.f32.mrb[13].mxu1 }
 0xaac   : > { %v1609_v9 = vpop.f32.mrb[14].mxu1 }
 0xaad   : > { %v1612_v10 = vadd.f32 %v1607_v6, %v2389_v32  ;;  %v1855_v11 = vpop.f32.mrb[15].mxu1 }
 0xaaf   : > { %1613 = vst.msk [vmem:[%s486_s18] sm:$0xff] %vm491_vm0, %v1612_v10 }
 0xab0 PF: > { %s2526_s23 = sld [smem:[#allocation11_spill]]  ;;  %p1872_p9 = scmp.ge.s32.totalorder %s2034_s16, 2 }
 0xab1   : > { %s1657_s27 = sand.u32 1, %s2022_s29  }
 0xab2   : > { %s1658_s25 = scalar_lea.sflag [#allocation4], %s1657_s27 }
 0xab6   : > { %p2527_p2 = scmp.ne.s32.totalorder %s2526_s23, 0 }
 0xab8   : > { %p1867_p3 = pnand %p1872_p9, %p2527_p2 }
 0xaba   : > { %2017 = dma.done.wait (!%p1867_p3), %s1658_s25, 128  }
 0xabb   : > { %2019 = vsyncadd (!%p1867_p3), %s1658_s25, 4294967168  ;;  %s2528_s16 = sld [smem:[#allocation9_spill]]  ;;  %s2529_s19 = sld [smem:[#allocation8_spill]] }
 0xabc   : > { %s2530_s15 = sld [smem:[#allocation10_spill]]  ;;  %s2531_s29 = smov %s2026_s30 }
 0xac1   : > { %p26_p4 = scmp.ge.s32.totalorder %s2528_s16, 4   ;;  %s2532_s30 = smov %s2529_s19 }
 0xac3   :  { %28 = sbr.rel (!%p26_p4) target bundleno = 4 (0x4), region = 124 }
 0xaca   :  { %1663 = vsyncpa [#allocation3], 1 }
 0xacb   :  { %1665 = vsyncpa [#allocation3 + $0x1], 1 }
 0xacc   :  { %1666 = vsyncpa [#allocation4], 1 }
 0xacd   :  { %1668 = vsyncpa [#allocation4 + $0x1], 1 }

// kernel: _encoder_forward.3
= control target key start
LH: loop header
LB: loop body
LE: loop exit
PB: predicated region body
PF: predicated region fallthrough
CT: control target
= control target key end

     0   :  { %s2385_s0 = inlined_call_operand.vmem [shape: f32[2,8,32], index: 0, kind: input, shape index: {}, may-alias: {0,13}]   ;;  %s2386_s1 = inlined_call_operand.vmem [shape: f32[1,32], index: 1, kind: input, shape index: {}]   ;;  %s2387_s2 = inlined_call_operand.vmem [shape: f32[1,32], index: 2, kind: input, shape index: {}]   ;;  %s2388_s3 = inlined_call_operand.vmem [shape: bf16[32,96], index: 3, kind: input, shape index: {}]   ;;  %s2389_s4 = inlined_call_operand.vmem [shape: f32[1,96], index: 4, kind: input, shape index: {}]   ;;  %s2390_s5 = inlined_call_operand.vmem [shape: bf16[32,32], index: 5, kind: input, shape index: {}]   ;;  %s2391_s6 = inlined_call_operand.vmem [shape: f32[1,32], index: 6, kind: input, shape index: {}]   ;;  %s2392_s7 = inlined_call_operand.vmem [shape: f32[1,32], index: 7, kind: input, shape index: {}]   ;;  %s2393_s8 = inlined_call_operand.vmem [shape: f32[1,32], index: 8, kind: input, shape index: {}]   ;;  %s2394_s9 = inlined_call_operand.vmem [shape: bf16[32,64], index: 9, kind: input, shape index: {}]   ;;  %s2395_s10 = inlined_call_operand.vmem [shape: f32[1,64], index: 10, kind: input, shape index: {}]   ;;  %s2396_s11 = inlined_call_operand.vmem [shape: bf16[64,32], index: 11, kind: input, shape index: {}]   ;;  %s2397_s12 = inlined_call_operand.vmem [shape: f32[1,32], index: 12, kind: input, shape index: {}]   ;;  %s2398_s13 = inlined_call_operand.vmem [shape: f32[2,8,32], index: 13, kind: output, shape index: {0}, may-alias: {0,13}]   ;;  %s2399_s14 = inlined_call_operand.hbm [shape: bf16[2,2,8,8], index: 14, kind: output, shape index: {1}]  }
   0x1   :  { %2403 = sst [smem:[#allocation5_spill]] %s2385_s0 }
   0x2   :  { %2404 = sst [smem:[#allocation6_spill]] %s2386_s1 }
   0x3   :  { %2405 = sst [smem:[#allocation7_spill]] %s2387_s2 }
   0x4   :  { %2406 = sst [smem:[#allocation8_spill]] %s2388_s3 }
   0x5   :  { %20 = vsyncpa [#allocation3], 0 }
   0x6   :  { %22 = vsyncpa [#allocation3 + $0x1], 0  ;;  %s2052_s29 = smov 0   ;;  %s2054_s30 = smov 0  }
   0x7   :  { %s2056_s15 = smov 0   ;;  %s2058_s16 = smov 0  }
   0x8 LB: > { %s2073_s17 = sadd.s32 4294967295, %s1964_s16   ;;  %s1708_s18 = sadd.s32 4294967294, %s1964_s16   ;;  %s1964_s16 = sphi %s2058_s16, %s2419_s16   ;;  %s1960_s15 = sphi %s2056_s15, %s2418_s15   ;;  %s1956_s30 = sphi %s2054_s30, %s2417_s30   ;;  %s1952_s29 = sphi %s2052_s29, %s2416_s29  }
   0x9   : > { %s2077_s19 = sadd.s32 1, %s1964_s16   ;;  %s339_s20 = sadd.s32 1, %s1960_s15 }
   0xa   : > { %s336_s21 = ssub.s32 %s1964_s16, %s2077_s19  ;;  %p349_p0 = scmp.ne.s32.totalorder %s1960_s15, %s1956_s30 }
   0xb   : > { %p337_p1 = scmp.eq.s32.totalorder %s336_s21, 0  ;;  %p350_p2 = scmp.eq.s32.totalorder %s2073_s17, 1 }
   0xc   : > { %p355_p3 = scmp.ne.s32.totalorder %s1956_s30, %s1952_s29  ;;  %p356_p4 = scmp.eq.s32.totalorder %s1708_s18, 1 }
   0xd   : > { %s2088_s22 = scalar_select %p337_p1, %s1960_s15, %s339_s20  }
   0xe   : > { %p2090_p5 = por %p350_p2, %p349_p0  ;;  %p2094_p6 = por %p356_p4, %p355_p3 }
   0xf   : > { %p1711_p7 = scmp.ge.s32.totalorder %s1964_s16, 1  ;;  %p417_p8 = scmp.lt.s32.totalorder %s1964_s16, 3 }
  0x11   : > { %p418_p9 = pnand %p1711_p7, %p417_p8 }
  0x12   : > { %p466_p10 = scmp.lt.s32.totalorder (!%p418_p9), %s2073_s17, 1  ;;  %vm478_vm0 = vcmask (!%p418_p9), 261120   ;;  %s2409_s0 = sld [smem:[#allocation5_spill]] (!%p418_p9)  ;;  %v1966_v8 = vmov (!%p418_p9), 0.0   ;;  %vm1967_vm1 = vmmov (!%p418_p9), 0   ;;  %v581_v30 = vlaneseq (!%p418_p9) }
  0x13   : > { %421 = sbr.rel (%p418_p9) target bundleno = 2706 (0xa92), region = 72  ;;  %s2410_s3 = sld [smem:[#allocation8_spill]] (!%p418_p9)  ;;  %1769 = vmatprep.subr.bf16.mxu0 (!%p418_p9), %v1966_v8  ;;  %1773 = vmatprep.mubr.msk.bf16.mxu0 (!%p418_p9), %vm1967_vm1, %v1966_v8  ;;  %v1717_v20 = vld [vmem:[%s2389_s4] ss:$0 sm:$0xff] (!%p418_p9)  ;;  %v1970_v28 = vmov (!%p418_p9), 1983009808  }
  0x14   : > { %1777 = vmatprep.subr.bf16.mxu1 (!%p418_p9), %v1966_v8  ;;  %1779 = vmatprep.mubr.msk.bf16.mxu1 (!%p418_p9), %vm1967_vm1, %v1966_v8  ;;  %s2411_s1 = sld [smem:[#allocation6_spill]] (!%p418_p9)  ;;  %s2412_s2 = sld [smem:[#allocation7_spill]] (!%p418_p9)  ;;  %v579_v29 = vunpack.c.l.s4 (!%p418_p9), %v1970_v28  ;;  %v582_v32 = vshrl.u32 (!%p418_p9), %v581_v30, 7  ;;  %v1971_v33 = vmov (!%p418_p9), 1934713408   ;;  %v1972_v39 = vmov (!%p418_p9), 0  }
  0x15   : > { %s1969_s20 = smov (!%p418_p9), 96   ;;  %v587_v34 = vunpack.c.l.s4 (!%p418_p9), %v1971_v33  ;;  %vm993_vm2 = vcmask (!%p418_p9), 130048   ;;  %vm1086_vm3 = vcmask (!%p418_p9), 64512   ;;  %s2402_s21 = sand.u32 (!%p418_p9), 1, %s1956_s30   ;;  %vm1111_vm4 = vcmask (!%p418_p9), 60416  }
  0x16   : > { %v580_v31 = vunpack.c.0.s8 (!%p418_p9), %v579_v29  ;;  %s1712_s27 = sshll.u32 (!%p418_p9), %s2402_s21, 3  ;;  %vm1117_vm5 = vcmask (!%p418_p9), 1043456   ;;  %vm1555_vm6 = vcmask (!%p418_p9), 523264  }
  0x17   : > { %v588_v37 = vunpack.c.0.s8 (!%p418_p9), %v587_v34  ;;  %s2229_s28 = scalar_lea.vmem (!%p418_p9), [#allocation2], %s1712_s27 }
  0x18   : > { %v2149_v35 = vsub.s32 (!%p418_p9), %v580_v31, %v582_v32  ;;  %s1622_s27 = sshll.u32 (!%p418_p9), %s2229_s28, 4  ;;  %s2328_s27 = int_to_ptr.vmem [resolvable:$true] %s1622_s27 }
  0x19   : > { %v1878_v7 = vld [vmem:[%s2410_s3] sm:$0xff] (!%p418_p9)   ;;  %v1879_v9 = vld [vmem:[%s2410_s3 + $0x8] sm:$0xff] (!%p418_p9)   ;;  %v2156_v42 = vsub.s32 (!%p418_p9), %v588_v37, %v582_v32 }
  0x1a   : > { %s2102_s25 = scalar_select %p466_p10, %s2073_s17, 1  ;;  %1770 = vmatpush3.bf16.msra.mxu0 %v1878_v7  ;;  %v1715_v14 = vld [vmem:[%s2411_s1] ss:$0 sm:$0xff] }
  0x1b   : > { %1771 = vmatprep.subr.bf16.mxu0 %v1966_v8  ;;  %v1716_v16 = vld [vmem:[%s2412_s2] ss:$0 sm:$0xff]  ;;  %s1746_s1 = sshll.u32 %s2073_s17, 7  ;;  %s1975_s17 = smov [#allocation2]  }
  0x1c   : > { %s2400_s26 = sshll.u32 %s2102_s25, 3  ;;  %s2325_s21 = scalar_lea.hbm %s2399_s14, %s1746_s1 }
  0x1d   : > { %s469_s18 = scalar_lea.vmem %s2409_s0, %s2400_s26  ;;  %s2401_s26 = smov 64  }
  0x1e   : > { %v2110_v0 = vld [vmem:[%s469_s18] sm:$0xff]  ;;  %1772 = vmatpush3.bf16.msra.mxu0 %v1879_v9  ;;  %s1968_s18 = smov 112   ;;  %s1906_s3 = sshll.u32 %s1975_s17, 4  ;;  %s1907_s3 = int_to_ptr.vmem [resolvable:$false] %s1906_s3 }
  0x1f   : > { %v479_v1 = vsel %vm478_vm0, %v2110_v0, 0.0  ;;  %1783 = vmatprep.subr.bf16.mxu0 %v1966_v8  ;;  %s1908_s2 = scalar_lea.vmem %s1907_s3, 256  ;;  %p1909_p0 = scmp.lt.s32.totalorder %s2328_s27, %s1907_s3 }
  0x20   : > { %480 = vadd.xlane.f32.xlu0 %v479_v1 }
  0xad   : > { %v481_v2 = vpop.xlane.xlu0 %480 }
  0xae   : > { %v483_v3 = vmul.f32 0.03125, %v481_v2 }
  0xb0   : > { %v484_v4 = vsub.f32 %v2110_v0, %v483_v3 }
  0xb2   : > { %v485_v5 = vmul.f32 %v484_v4, %v484_v4 }
  0xb4   : > { %v486_v6 = vsel %vm478_vm0, %v485_v5, 0.0 }
  0xb5   : > { %487 = vadd.xlane.f32.xlu0 %v486_v6 }
 0x142   : > { %v488_v10 = vpop.xlane.xlu0 %487 }
 0x143   : > { %v489_v11 = vmul.f32 0.03125, %v488_v10 }
 0x145   : > { %v490_v12 = vadd.f32 1e-12, %v489_v11 }
 0x147   : > { %1888 = vrsqrt.f32 %v490_v12 }
 0x151   : > { %v1889_v13 = vpop.eup %1888 }
 0x152   : > { %v492_v15 = vmul.f32 %v1889_v13, %v484_v4 }
 0x154   : > { %v499_v17 = vmul.f32 %v1715_v14, %v492_v15 }
 0x156   : > { %v506_v18 = vadd.f32 %v1716_v16, %v499_v17 }
 0x158   : > { %v507_v19 = vpack.c.bf16 %v506_v18, %v506_v18 }
 0x15a   : > { %1774 = vmatmul.mubr.msk.bf16.vlgmr.msra.gmra.mrb[0].mxu0 %vm478_vm0, %v507_v19 }
 0x15b   : > { %1785 = vmatprep.mubr.msk.bf16.mxu0 %vm1967_vm1, %v1966_v8 }
 0x22d   : > { %v568_v21 = vpop.f32.mrb[0].mxu0 }
 0x22e   : > { %v569_v22 = vadd.f32 %v1717_v20, %v568_v21  ;;  %v1775_v23 = vpop.f32.mrb[1].mxu0 }
 0x22f   : > { %v571_v24 = vpop.f32.mrb[2].mxu0 }
 0x230   : > { %v2142_v25 = vpack.c.bf16 %v569_v22, %v569_v22  ;;  %v1776_v26 = vpop.f32.mrb[3].mxu0 }
 0x232   : > { %576 = vrot.lane.b32.xlu1 %v2142_v25, %s1968_s18  ;;  %v584_v38 = vrot.slane %v2142_v25, %v2149_v35 }
 0x234   : > { %v585_v43 = vcombine.high %v584_v38, %v1972_v39  ;;  %v592_v47 = vrot.slane %v584_v38, %v2156_v42 }
 0x236   : > { %713 = vrot.lane.b32.xlu1 %v2142_v25, %s1969_s20  ;;  %v599_v48 = vrot.slane %v585_v43, %v2156_v42  ;;  %v600_v52 = vcombine.high %v592_v47, %v1972_v39  ;;  %v631_v60 = vshrl.u32 %v592_v47, 16 }
 0x238   : > { %v601_v54 = vcombine.high %v599_v48, %v1972_v39  ;;  %v639_v63 = vshrl.u32 %v600_v52, 16  ;;  %v647_v6 = vshrl.u32 %v599_v48, 16 }
 0x23a   : > { %v655_v7 = vshrl.u32 %v601_v54, 16 }
 0x2a4   : > { %v2146_v27 = vpop.permute.xlu1 %576 }
 0x2a5   : > { %715 = vrot.lane.b32.xlu0 %v2146_v27, %s1969_s20  ;;  %v609_v36 = vrot.slane %v2146_v27, %v2149_v35  ;;  %s1902_s20 = scalar_lea.vmem %s2328_s27, 128 }
 0x2a6   : > { %p1903_p11 = scmp.ne.s32.totalorder %s2328_s27, %s1902_s20  ;;  %p1910_p1 = scmp.lt.s32.totalorder %s1908_s2, %s1902_s20 }
 0x2a7   : > { %v610_v40 = vcombine.high %v609_v36, %v1972_v39  ;;  %v2160_v44 = vrot.slane %v609_v36, %v2156_v42 }
 0x2a8   : > { %v714_v41 = vpop.permute.xlu1 %713  ;;  %p1904_p12 = pnand %p1903_p11, %p2090_p5  ;;  %p1911_p2 = por %p1910_p1, %p1909_p0 }
 0x2a9   : > { %v724_v45 = vrot.slane %v714_v41, %v2149_v35  ;;  %v624_v46 = vrot.slane %v610_v40, %v2156_v42  ;;  %v625_v49 = vcombine.high %v2160_v44, %v1972_v39  ;;  %v632_v55 = vshrl.u32 %v2160_v44, 16 }
 0x2aa   : > { %v629_v41 = vpack.i.b16 %v2160_v44, %v592_v47  ;;  %p1905_p13 = pneg %p1904_p12 }
 0x2ab   : > { %v725_v50 = vcombine.high %v724_v45, %v1972_v39  ;;  %v626_v51 = vcombine.high %v624_v46, %v1972_v39  ;;  %v732_v53 = vrot.slane %v724_v45, %v2156_v42  ;;  %v640_v57 = vshrl.u32 %v625_v49, 16 }
 0x2ac   : > { %v648_v61 = vshrl.u32 %v624_v46, 16  ;;  %v633_v4 = vpack.i.b16 %v632_v55, %v631_v60  ;;  %v637_v5 = vpack.i.b16 %v625_v49, %v600_v52  ;;  %v645_v31 = vpack.i.b16 %v624_v46, %v599_v48  ;;  %p1912_p3 = pnand %p1911_p2, %p1905_p13 }
 0x2ad   : > { %v739_v58 = vrot.slane %v725_v50, %v2156_v42  ;;  %v656_v62 = vshrl.u32 %v626_v51, 16  ;;  %v740_v1 = vcombine.high %v732_v53, %v1972_v39  ;;  %v641_v9 = vpack.i.b16 %v640_v57, %v639_v63 }
 0x2ae   : > { %v649_v13 = vpack.i.b16 %v648_v61, %v647_v6  ;;  %v653_v14 = vpack.i.b16 %v626_v51, %v601_v54  ;;  %v771_v17 = vshrl.u32 %v732_v53, 16 }
 0x2af   : > { %v741_v10 = vcombine.high %v739_v58, %v1972_v39  ;;  %v657_v15 = vpack.i.b16 %v656_v62, %v655_v7  ;;  %v779_v18 = vshrl.u32 %v740_v1, 16  ;;  %v787_v21 = vshrl.u32 %v739_v58, 16 }
 0x2b0   : > { %v667_v43 = vcombine.low %v637_v5, %v653_v14  ;;  %v683_v49 = vcombine.low %v633_v4, %v649_v13 }
 0x2b1   : > { %v795_v26 = vshrl.u32 %v741_v10, 16  ;;  %v691_v40 = vcombine.low %v641_v9, %v657_v15 }
 0x2b2   : > { %v674_v44 = vrot.slane %v667_v43, %v2149_v35  ;;  %v690_v47 = vrot.slane %v683_v49, %v2149_v35 }
 0x2b3   : > { %v698_v55 = vrot.slane %v691_v40, %v2149_v35 }
 0x2b5   : > { %v699_v60 = vcombine.low %v690_v47, %v698_v55 }
 0x2b7   : > { %v706_v4 = vrot.slane %v699_v60, %v2156_v42 }
 0x2b9   : > { %v711_v7 = vshrl.u32 %v706_v4, 16 }
 0x317   : > { %v716_v56 = vpop.permute.xlu0 %715 }
 0x318   : > { %v749_v59 = vrot.slane %v716_v56, %v2149_v35 }
 0x31a   : > { %v750_v2 = vcombine.high %v749_v59, %v1972_v39  ;;  %v757_v3 = vrot.slane %v749_v59, %v2156_v42 }
 0x31c   : > { %v764_v11 = vrot.slane %v750_v2, %v2156_v42  ;;  %v765_v12 = vcombine.high %v757_v3, %v1972_v39  ;;  %v772_v16 = vshrl.u32 %v757_v3, 16  ;;  %v769_v22 = vpack.i.b16 %v757_v3, %v732_v53 }
 0x31d   : > { %v659_v53 = vcombine.low %v629_v41, %v645_v31 }
 0x31e   : > { %v766_v19 = vcombine.high %v764_v11, %v1972_v39  ;;  %v780_v20 = vshrl.u32 %v765_v12, 16  ;;  %v785_v23 = vpack.i.b16 %v764_v11, %v739_v58  ;;  %v788_v24 = vshrl.u32 %v764_v11, 16 }
 0x31f   : > { %v777_v28 = vpack.i.b16 %v765_v12, %v740_v1  ;;  %v773_v32 = vpack.i.b16 %v772_v16, %v771_v17  ;;  %v666_v59 = vrot.slane %v659_v53, %v2149_v35 }
 0x320   : > { %v793_v29 = vpack.i.b16 %v766_v19, %v741_v10  ;;  %v796_v30 = vshrl.u32 %v766_v19, 16  ;;  %v789_v33 = vpack.i.b16 %v788_v24, %v787_v21  ;;  %v799_v34 = vcombine.low %v769_v22, %v785_v23 }
 0x321   : > { %v781_v36 = vpack.i.b16 %v780_v20, %v779_v18  ;;  %v675_v1 = vcombine.low %v666_v59, %v674_v44 }
 0x322   : > { %v797_v37 = vpack.i.b16 %v796_v30, %v795_v26  ;;  %v807_v38 = vcombine.low %v777_v28, %v793_v29  ;;  %v823_v45 = vcombine.low %v773_v32, %v789_v33  ;;  %v806_v50 = vrot.slane %v799_v34, %v2149_v35 }
 0x323   : > { %v682_v6 = vrot.slane %v675_v1, %v2156_v42 }
 0x324   : > { %v814_v51 = vrot.slane %v807_v38, %v2149_v35  ;;  %v831_v52 = vcombine.low %v781_v36, %v797_v37  ;;  %v830_v46 = vrot.slane %v823_v45, %v2149_v35 }
 0x325   : > { %v709_v9 = vpack.i.b16 %v706_v4, %v682_v6  ;;  %v710_v10 = vshrl.u32 %v682_v6, 16 }
 0x326   : > { %v815_v54 = vcombine.low %v806_v50, %v814_v51  ;;  %v838_v48 = vrot.slane %v831_v52, %v2149_v35 }
 0x327   : > { %v712_v11 = vpack.i.b16 %v711_v7, %v710_v10 }
 0x328   : > { %v822_v56 = vrot.slane %v815_v54, %v2156_v42  ;;  %v839_v57 = vcombine.low %v830_v46, %v838_v48 }
 0x32a   : > { %v846_v58 = vrot.slane %v839_v57, %v2156_v42  ;;  %v850_v62 = vshrl.u32 %v822_v56, 16 }
 0x32c   : > { %v849_v61 = vpack.i.b16 %v846_v58, %v822_v56  ;;  %v851_v63 = vshrl.u32 %v846_v58, 16 }
 0x32e   : > { %v998_v2 = vsel %vm993_vm2, %v849_v61, 0  ;;  %v852_v3 = vpack.i.b16 %v851_v63, %v850_v62 }
 0x32f   : > { %1778 = vmatpush3.bf16.xpose.msra.mxu1 %v998_v2 }
 0x330   : > { %v1044_v5 = vsel %vm993_vm2, %v852_v3, 0  ;;  %1789 = vmatprep.subr.bf16.mxu1 %v1966_v8 }
 0x331   : > { %1784 = vmatpush3.bf16.xpose.msra.mxu0 %v1044_v5 }
 0x332   : > { %1795 = vmatprep.subr.bf16.mxu0 %v1966_v8 }
 0x336   : > { %1780 = vmatmul.mubr.msk.bf16.vlgmr.msra.gmra.mrb[0].mxu1 %vm993_vm2, %v709_v9 }
 0x337   : > { %1791 = vmatprep.mubr.msk.bf16.mxu1 %vm1967_vm1, %v1966_v8 }
 0x338   : > { %1786 = vmatmul.mubr.msk.bf16.vlgmr.msra.gmra.mrb[4].mxu0 %vm993_vm2, %v712_v11 }
 0x339   : > { %1797 = vmatprep.mubr.msk.bf16.mxu0 %vm1967_vm1, %v1966_v8 }
 0x409   : > { %v1034_v12 = vpop.f32.mrb[0].mxu1 }
 0x40a   : > { %v1781_v13 = vpop.f32.mrb[1].mxu1  ;;  %v1087_v14 = vsel %vm1086_vm3, %v1034_v12, -inf }
 0x40b   : > { %1088 = vmax.xlane.f32.xlu1 %v1087_v14  ;;  %v1037_v15 = vpop.f32.mrb[2].mxu1  ;;  %v1080_v16 = vpop.f32.mrb[4].mxu0 }
 0x40c   : > { %v1782_v17 = vpop.f32.mrb[3].mxu1  ;;  %v1787_v18 = vpop.f32.mrb[5].mxu0  ;;  %v1090_v19 = vsel %vm1086_vm3, %v1080_v16, -inf }
 0x40d   : > { %1091 = vmax.xlane.f32.xlu0 %v1090_v19  ;;  %v1083_v20 = vpop.f32.mrb[6].mxu0 }
 0x40e   : > { %v1788_v21 = vpop.f32.mrb[7].mxu0 }
 0x423   : > { %855 = vrot.lane.b32.xlu0 %v2146_v27, %s2401_s26 }
 0x498   : > { %v1089_v22 = vpop.xlane.xlu1 %1088 }
 0x499   : > { %v1093_v23 = vsub.f32 %v1034_v12, %v1089_v22 }
 0x49a   : > { %v1092_v24 = vpop.xlane.xlu0 %1091 }
 0x49b   : > { %v1095_v26 = vmul.f32 1.442695, %v1093_v23  ;;  %v1094_v28 = vsub.f32 %v1080_v16, %v1092_v24 }
 0x49d   : > { %1890 = vpow2.f32 %v1095_v26  ;;  %v1097_v29 = vmul.f32 1.442695, %v1094_v28 }
 0x49e   : > { %v856_v27 = vpop.permute.xlu0 %855 }
 0x49f   : > { %1892 = vpow2.f32 %v1097_v29  ;;  %v889_v36 = vrot.slane %v856_v27, %v2149_v35 }
 0x4a1   : > { %v890_v38 = vcombine.high %v889_v36, %v1972_v39  ;;  %v897_v40 = vrot.slane %v889_v36, %v2156_v42 }
 0x4a3   : > { %v904_v43 = vrot.slane %v890_v38, %v2156_v42  ;;  %v905_v49 = vcombine.high %v897_v40, %v1972_v39  ;;  %v912_v48 = vshrl.u32 %v897_v40, 16 }
 0x4a5   : > { %v906_v53 = vcombine.high %v904_v43, %v1972_v39  ;;  %v920_v44 = vshrl.u32 %v905_v49, 16  ;;  %v928_v47 = vshrl.u32 %v904_v43, 16 }
 0x4a7   : > { %v1891_v30 = vpop.eup %1890  ;;  %v936_v1 = vshrl.u32 %v906_v53, 16 }
 0x4a8   : > { %v1099_v31 = vsel %vm1086_vm3, %v1891_v30, 0.0 }
 0x4a9   : > { %v1893_v32 = vpop.eup %1892  ;;  %1100 = vadd.xlane.f32.xlu1 %v1099_v31  ;;  %v1880_v31 = vld [vmem:[%s2390_s5] sm:$0xff]  }
 0x4aa   : > { %v1102_v33 = vsel %vm1086_vm3, %v1893_v32, 0.0 }
 0x4ad   : > { %1103 = vadd.xlane.f32.xlu1 %v1102_v33 }
 0x4be   : > { %853 = vrot.lane.b32.xlu1 %v2142_v25, %s2401_s26  ;;  %s1974_s26 = smov 16  }
 0x536   : > { %v1101_v34 = vpop.xlane.xlu1 %1100 }
 0x537   : > { %1894 = vrcp.f32 %v1101_v34 }
 0x53a   : > { %v1104_v37 = vpop.xlane.xlu1 %1103 }
 0x53b   : > { %1896 = vrcp.f32 %v1104_v37 }
 0x53e   : > { %v854_v41 = vpop.permute.xlu1 %853 }
 0x53f   : > { %v864_v45 = vrot.slane %v854_v41, %v2149_v35 }
 0x541   : > { %v1895_v25 = vpop.eup %1894  ;;  %v865_v50 = vcombine.high %v864_v45, %v1972_v39  ;;  %v872_v51 = vrot.slane %v864_v45, %v2156_v42 }
 0x542   : > { %v1106_v52 = vmul.f32 %v1895_v25, %v1891_v30 }
 0x543   : > { %v879_v54 = vrot.slane %v865_v50, %v2156_v42  ;;  %v880_v46 = vcombine.high %v872_v51, %v1972_v39  ;;  %v911_v55 = vshrl.u32 %v872_v51, 16  ;;  %v909_v61 = vpack.i.b16 %v897_v40, %v872_v51 }
 0x544   : > { %v1109_v56 = vpack.c.bf16 %v1106_v52, %v1106_v52 }
 0x545   : > { %v1897_v57 = vpop.eup %1896  ;;  %v881_v58 = vcombine.high %v879_v54, %v1972_v39  ;;  %v919_v59 = vshrl.u32 %v880_v46, 16  ;;  %v925_v62 = vpack.i.b16 %v904_v43, %v879_v54  ;;  %v927_v63 = vshrl.u32 %v879_v54, 16 }
 0x546   : > { %v1108_v60 = vmul.f32 %v1897_v57, %v1893_v32  ;;  %1112 = vst.msk [vmem:[%s2229_s28] sm:$0xf] %vm1111_vm4, %v1109_v56  ;;  %v917_v2 = vpack.i.b16 %v905_v49, %v880_v46  ;;  %v913_v5 = vpack.i.b16 %v912_v48, %v911_v55  ;;  %v1881_v32 = vld [vmem:[%s2390_s5 + $0x8] sm:$0xff]  }
 0x547   : > { %v933_v3 = vpack.i.b16 %v906_v53, %v881_v58  ;;  %v935_v4 = vshrl.u32 %v881_v58, 16  ;;  %v929_v6 = vpack.i.b16 %v928_v47, %v927_v63  ;;  %v939_v7 = vcombine.low %v909_v61, %v925_v62 }
 0x548   : > { %v1110_v9 = vpack.c.bf16 %v1108_v60, %v1108_v60  ;;  %v921_v10 = vpack.i.b16 %v920_v44, %v919_v59 }
 0x549   : > { %v937_v11 = vpack.i.b16 %v936_v1, %v935_v4  ;;  %v947_v12 = vcombine.low %v917_v2, %v933_v3  ;;  %v963_v13 = vcombine.low %v913_v5, %v929_v6  ;;  %v946_v14 = vrot.slane %v939_v7, %v2149_v35 }
 0x54a   : > { %1113 = vst.msk [vmem:[%s2229_s28 + $0x4] sm:$0xf] %vm1111_vm4, %v1110_v9 }
 0x54b   : > { %v971_v15 = vcombine.low %v921_v10, %v937_v11  ;;  %v954_v16 = vrot.slane %v947_v12, %v2149_v35  ;;  %v970_v18 = vrot.slane %v963_v13, %v2149_v35 }
 0x54d   : > { %v955_v17 = vcombine.low %v946_v14, %v954_v16  ;;  %v978_v19 = vrot.slane %v971_v15, %v2149_v35 }
 0x54f   : > { %v962_v20 = vrot.slane %v955_v17, %v2156_v42  ;;  %v979_v21 = vcombine.low %v970_v18, %v978_v19 }
 0x551   : > { %v986_v22 = vrot.slane %v979_v21, %v2156_v42  ;;  %v990_v24 = vshrl.u32 %v962_v20, 16 }
 0x553   : > { %v989_v23 = vpack.i.b16 %v986_v22, %v962_v20  ;;  %v991_v26 = vshrl.u32 %v986_v22, 16 }
 0x555   : > { %v1119_v28 = vsel %vm1117_vm5, %v989_v23, 0  ;;  %v992_v29 = vpack.i.b16 %v991_v26, %v990_v24 }
 0x556   : > { %1790 = vmatpush3.bf16.msra.mxu1 %v1119_v28 }
 0x557   : > { %v1165_v30 = vsel %vm1117_vm5, %v992_v29, 0  ;;  %1801 = vmatprep.subr.bf16.mxu1 %v1966_v8 }
 0x558   : > { %1796 = vmatpush3.bf16.msra.mxu0 %v1165_v30 }
 0x559   : > { %1792 = vmatmul.mubr.msk.bf16.vlgmr.msra.gmra.mrb[4].mxu1 %vm1086_vm3, %v1109_v56  ;;  %1809 = vmatprep.subr.bf16.mxu0 %v1966_v8 }
 0x55a   : > { %1805 = vmatprep.mubr.msk.bf16.mxu1 %vm1967_vm1, %v1966_v8  ;;  %1802 = vmatpush3.bf16.msra.mxu1 %v1880_v31 }
 0x55b   : > { %1798 = vmatmul.mubr.msk.bf16.vlgmr.msra.gmra.mrb[8].mxu0 %vm1086_vm3, %v1110_v9  ;;  %1803 = vmatprep.subr.bf16.mxu1 %v1966_v8 }
 0x55c   : > { %1813 = vmatprep.mubr.msk.bf16.mxu0 %vm1967_vm1, %v1966_v8 }
 0x55e   : > { %1804 = vmatpush3.bf16.msra.mxu1 %v1881_v32 }
 0x55f   : > { %1817 = vmatprep.subr.bf16.mxu1 %v1966_v8 }
 0x62c   : > { %v1155_v33 = vpop.f32.mrb[4].mxu1 }
 0x62d   : > { %v1207_v27 = vpack.c.bf16 %v1155_v33, %v1155_v33  ;;  %v1793_v34 = vpop.f32.mrb[5].mxu1 }
 0x62e   : > { %v1158_v36 = vpop.f32.mrb[6].mxu1  ;;  %v1201_v37 = vpop.f32.mrb[8].mxu0 }
 0x62f   : > { %v1214_v38 = vrot.slane %v1207_v27, %v2149_v35  ;;  %v1232_v40 = vpack.c.bf16 %v1201_v37, %v1201_v37  ;;  %v1794_v41 = vpop.f32.mrb[7].mxu1  ;;  %v1799_v43 = vpop.f32.mrb[9].mxu0 }
 0x630   : > { %v1204_v45 = vpop.f32.mrb[10].mxu0  ;;  %v1882_v41 = vld [vmem:[%s2394_s9] sm:$0xff]  }
 0x631   : > { %v1215_v25 = vcombine.high %v1214_v38, %v1972_v39  ;;  %v1222_v49 = vrot.slane %v1214_v38, %v2156_v42  ;;  %v1239_v50 = vrot.slane %v1232_v40, %v2149_v35  ;;  %v1800_v51 = vpop.f32.mrb[11].mxu0  ;;  %1810 = vmatpush3.bf16.msra.mxu0 %v1882_v41 }
 0x632   : > { %1811 = vmatprep.subr.bf16.mxu0 %v1966_v8 }
 0x633   : > { %v1229_v52 = vrot.slane %v1215_v25, %v2156_v42  ;;  %v1230_v53 = vcombine.high %v1222_v49, %v1972_v39  ;;  %v1240_v54 = vcombine.high %v1239_v50, %v1972_v39  ;;  %v1247_v46 = vrot.slane %v1239_v50, %v2156_v42  ;;  %v1729_v50 = vld [vmem:[%s2392_s7] ss:$0 sm:$0xff] }
 0x634   : > { %v1261_v55 = vshrl.u32 %v1222_v49, 16 }
 0x635   : > { %v1231_v48 = vcombine.high %v1229_v52, %v1972_v39  ;;  %v1254_v56 = vrot.slane %v1240_v54, %v2156_v42  ;;  %v1269_v57 = vshrl.u32 %v1230_v53, 16  ;;  %v1255_v44 = vcombine.high %v1247_v46, %v1972_v39 }
 0x636   : > { %v1259_v47 = vpack.i.b16 %v1247_v46, %v1222_v49  ;;  %v1262_v58 = vshrl.u32 %v1247_v46, 16  ;;  %v1277_v59 = vshrl.u32 %v1229_v52, 16 }
 0x637   : > { %v1256_v60 = vcombine.high %v1254_v56, %v1972_v39  ;;  %v1275_v61 = vpack.i.b16 %v1254_v56, %v1229_v52  ;;  %v1278_v62 = vshrl.u32 %v1254_v56, 16  ;;  %v1285_v63 = vshrl.u32 %v1231_v48, 16  ;;  %v1730_v52 = vld [vmem:[%s2393_s8] ss:$0 sm:$0xff]  ;;  %v1886_v56 = vld [vmem:[%s2396_s11 + $0x10] sm:$0xff]  }
 0x638   : > { %v1263_v1 = vpack.i.b16 %v1262_v58, %v1261_v55  ;;  %v1267_v2 = vpack.i.b16 %v1255_v44, %v1230_v53  ;;  %v1270_v3 = vshrl.u32 %v1255_v44, 16  ;;  %v1885_v55 = vld [vmem:[%s2396_s11 + $0x8] sm:$0xff]   ;;  %v1731_v44 = vld [vmem:[%s2395_s10] ss:$0 sm:$0xff] }
 0x639   : > { %v1279_v4 = vpack.i.b16 %v1278_v62, %v1277_v59  ;;  %v1283_v5 = vpack.i.b16 %v1256_v60, %v1231_v48  ;;  %v1286_v6 = vshrl.u32 %v1256_v60, 16  ;;  %v1289_v7 = vcombine.low %v1259_v47, %v1275_v61  ;;  %v1884_v48 = vld [vmem:[%s2396_s11] sm:$0xff]  }
 0x63a   : > { %v1271_v9 = vpack.i.b16 %v1270_v3, %v1269_v57  ;;  %v1887_v57 = vld [vmem:[%s2396_s11 + $0x18] sm:$0xff]  }
 0x63b   : > { %v1287_v10 = vpack.i.b16 %v1286_v6, %v1285_v63  ;;  %v1297_v11 = vcombine.low %v1267_v2, %v1283_v5  ;;  %v1313_v12 = vcombine.low %v1263_v1, %v1279_v4  ;;  %v1296_v13 = vrot.slane %v1289_v7, %v2149_v35 }
 0x63d   : > { %v1304_v14 = vrot.slane %v1297_v11, %v2149_v35  ;;  %v1321_v15 = vcombine.low %v1271_v9, %v1287_v10  ;;  %v1320_v16 = vrot.slane %v1313_v12, %v2149_v35 }
 0x63f   : > { %v1305_v39 = vcombine.low %v1296_v13, %v1304_v14  ;;  %v1328_v17 = vrot.slane %v1321_v15, %v2149_v35  ;;  %v1725_v35 = vld [vmem:[%s2391_s6] ss:$0 sm:$0xff] }
 0x641   : > { %v1312_v18 = vrot.slane %v1305_v39, %v2156_v42  ;;  %v1329_v19 = vcombine.low %v1320_v16, %v1328_v17 }
 0x643   : > { %v1336_v20 = vrot.slane %v1329_v19, %v2156_v42  ;;  %v1340_v21 = vshrl.u32 %v1312_v18, 16 }
 0x645   : > { %v1341_v22 = vshrl.u32 %v1336_v20, 16  ;;  %v1339_v23 = vpack.i.b16 %v1336_v20, %v1312_v18 }
 0x647   : > { %v1342_v24 = vpack.i.b16 %v1341_v22, %v1340_v21 }
 0x649   : > { %1343 = vrot.lane.b32.xlu1 %v1342_v24, %s1974_s26  ;;  %s2413_s26 = sand.u32 1, %s1956_s30  }
 0x64a   : > { %s2332_s18 = scalar_lea.sflag [#allocation3], %s2413_s26 }
 0x6bb   : > { %v1344_v26 = vpop.permute.xlu1 %1343 }
 0x6bc   : > { %v1347_v28 = vsel %vm993_vm2, %v1339_v23, %v1344_v26 }
 0x6bd   : > { %1806 = vmatmul.mubr.msk.bf16.vlgmr.msra.gmra.mrb[8].mxu1 %vm478_vm0, %v1347_v28 }
 0x6be   : > { %1825 = vmatprep.mubr.msk.bf16.mxu1 %vm1967_vm1, %v1966_v8  ;;  %1818 = vmatpush3.bf16.msra.mxu1 %v1884_v48 }
 0x6bf   : > { %1819 = vmatprep.subr.bf16.mxu1 %v1966_v8 }
 0x6c2   : > { %1820 = vmatpush3.bf16.msra.mxu1 %v1885_v55 }
 0x6c3   : > { %1821 = vmatprep.subr.bf16.mxu1 %v1966_v8 }
 0x6c6   : > { %1822 = vmatpush3.bf16.msra.mxu1 %v1886_v56 }
 0x6c7   : > { %1823 = vmatprep.subr.bf16.mxu1 %v1966_v8 }
 0x6ca   : > { %1824 = vmatpush3.bf16.msra.mxu1 %v1887_v57 }
 0x790   : > { %v1407_v29 = vpop.f32.mrb[8].mxu1 }
 0x791   : > { %v1408_v42 = vadd.f32 %v1725_v35, %v1407_v29  ;;  %v1807_v30 = vpop.f32.mrb[9].mxu1 }
 0x792   : > { %v1410_v31 = vpop.f32.mrb[10].mxu1 }
 0x793   : > { %v2283_v32 = vadd.f32 %v1408_v42, %v2110_v0  ;;  %v1808_v33 = vpop.f32.mrb[11].mxu1  ;;  %v1883_v0 = vld [vmem:[%s2394_s9 + $0x8] sm:$0xff]  }
 0x794   : > { %1812 = vmatpush3.bf16.msra.mxu0 %v1883_v0 }
 0x795   : > { %v1416_v27 = vsel %vm478_vm0, %v2283_v32, 0.0 }
 0x796   : > { %1417 = vadd.xlane.f32.xlu1 %v1416_v27 }
 0x823   : > { %v1418_v34 = vpop.xlane.xlu1 %1417 }
 0x824   : > { %v1419_v36 = vmul.f32 0.03125, %v1418_v34 }
 0x826   : > { %v1420_v37 = vsub.f32 %v2283_v32, %v1419_v36 }
 0x828   : > { %v1421_v38 = vmul.f32 %v1420_v37, %v1420_v37 }
 0x82a   : > { %v1422_v40 = vsel %vm478_vm0, %v1421_v38, 0.0 }
 0x82b   : > { %1423 = vadd.xlane.f32.xlu0 %v1422_v40 }
 0x8b8   : > { %v1424_v43 = vpop.xlane.xlu0 %1423 }
 0x8b9   : > { %v1425_v45 = vmul.f32 0.03125, %v1424_v43 }
 0x8bb   : > { %v1426_v25 = vadd.f32 1e-12, %v1425_v45 }
 0x8bd   : > { %1898 = vrsqrt.f32 %v1426_v25 }
 0x8c7   : > { %v1899_v49 = vpop.eup %1898 }
 0x8c8   : > { %v1428_v51 = vmul.f32 %v1899_v49, %v1420_v37 }
 0x8ca   : > { %v1435_v53 = vmul.f32 %v1729_v50, %v1428_v51 }
 0x8cc   : > { %v1442_v54 = vadd.f32 %v1730_v52, %v1435_v53 }
 0x8ce   : > { %v1443_v46 = vpack.c.bf16 %v1442_v54, %v1442_v54 }
 0x8d0   : > { %1814 = vmatmul.mubr.msk.bf16.vlgmr.msra.gmra.mrb[12].mxu0 %vm478_vm0, %v1443_v46 }
 0x9a3   : > { %v1504_v47 = vpop.f32.mrb[12].mxu0 }
 0x9a4   : > { %v1505_v58 = vadd.f32 %v1731_v44, %v1504_v47  ;;  %v1815_v59 = vpop.f32.mrb[13].mxu0 }
 0x9a5   : > { %v1507_v60 = vpop.f32.mrb[14].mxu0 }
 0x9a6   : > { %v1511_v61 = vmul.f32 0.70710677, %v1505_v58  ;;  %v1816_v62 = vpop.f32.mrb[15].mxu0  ;;  %v1510_v63 = vmul.f32 0.5, %v1505_v58 }
 0x9a8   : > { %1900 = verf.f32 %v1511_v61 }
 0x9b2   : > { %v1901_v8 = vpop.eup %1900 }
 0x9b3   : > { %v1513_v1 = vadd.f32 1.0, %v1901_v8 }
 0x9b5   : > { %v1514_v2 = vmul.f32 %v1513_v1, %v1510_v63 }
 0x9b7   : > { %v1515_v3 = vpack.c.bf16 %v1514_v2, %v1514_v2 }
 0x9b9   : > { %1826 = vmatmul.mubr.msk.bf16.vlgmr.msra.gmra.mrb[12].mxu1 %vm1555_vm6, %v1515_v3 }
 0x9ba   : > { %1915 = shalt.err (!%p1912_p3)
}
 0x9bb   : > { %s1916_s28 = scalar_lea.hbm %s2325_s21, 128  ;;  %s1920_s26 = scalar_lea.hbm %s2399_s14, 256 }
 0x9bc   : > { %p1917_p4 = scmp.ne.s32.totalorder %s2325_s21, %s1916_s28  ;;  %p1921_p9 = scmp.lt.u32.totalorder %s2325_s21, %s2399_s14 }
 0x9bd   : > { %p1922_p10 = scmp.lt.u32.totalorder %s1920_s26, %s1916_s28  ;;  %p1924_p12 = scmp.lt.u32.totalorder %s1916_s28, %s2325_s21 }
 0x9be   : > { %p1918_p7 = pnand %p1917_p4, %p2090_p5 }
 0x9bf   : > { %p1923_p11 = por %p1922_p10, %p1921_p9 }
 0x9c0   : > { %p1919_p8 = pneg %p1918_p7 }
 0x9c1   : > { %p1925_p13 = por %p1924_p12, %p1923_p11 }
 0x9c3   : > { %p1926_p0 = pnand %p1925_p13, %p1919_p8 }
 0x9c5   : > { %1929 = shalt.err (!%p1926_p0)
}
 0x9c6   : > { %s1976_s20 = smov 4   ;;  %s2414_s2 = smov 64   ;;  %v1735_v4 = vld [vmem:[%s2397_s12] ss:$0 sm:$0xff] }
 0x9c7   : > { %1829 = dma.vmem_to_hbm [thread:$0]  (%p2090_p5), %s2328_s27, 128, %s2325_s21, %s2332_s18, %s2414_s2, %s2414_s2, %s1976_s20  }
 0x9c8   : > { %s2415_s28 = sshll.u32 %s2102_s25, 3 }
 0x9c9   : > { %s473_s3 = scalar_lea.vmem %s2398_s13, %s2415_s28 }
 0xa8c   : > { %v1593_v5 = vpop.f32.mrb[12].mxu1 }
 0xa8d   : > { %v1594_v6 = vadd.f32 %v1735_v4, %v1593_v5  ;;  %v1827_v7 = vpop.f32.mrb[13].mxu1 }
 0xa8e   : > { %v1596_v9 = vpop.f32.mrb[14].mxu1 }
 0xa8f   : > { %v1599_v10 = vadd.f32 %v1594_v6, %v2283_v32  ;;  %v1828_v11 = vpop.f32.mrb[15].mxu1 }
 0xa91   : > { %1600 = vst.msk [vmem:[%s473_s3] sm:$0xff] %vm478_vm0, %v1599_v10 }
 0xa92 PF: > { %p1835_p5 = scmp.ge.s32.totalorder %s1964_s16, 2  ;;  %s1644_s23 = sand.u32 1, %s1952_s29  }
 0xa93   : > { %s1645_s21 = scalar_lea.sflag [#allocation3], %s1644_s23 }
 0xa94   : > { %p1832_p1 = pnand %p1835_p5, %p2094_p6 }
 0xa96   : > { %1947 = dma.done.wait (!%p1832_p1), %s1645_s21, 128  }
 0xa97   : > { %1949 = vsyncadd (!%p1832_p1), %s1645_s21, 4294967168  ;;  %p25_p2 = scmp.ge.s32.totalorder %s2077_s19, 4   ;;  %s2416_s29 = smov %s1956_s30 }
 0xa98   : > { %s2417_s30 = smov %s1960_s15  ;;  %s2418_s15 = smov %s2088_s22 }
 0xa99   : > { %s2419_s16 = smov %s2077_s19  ;;  %27 = sbr.rel (!%p25_p2) target bundleno = 8 (0x8), region = 119 }
 0xaa0   :  { %1650 = vsyncpa [#allocation3], 1 }
 0xaa1   :  { %1652 = vsyncpa [#allocation3 + $0x1], 1 }

</bundles_post_ra>
